<compile_context>
chip_gen: v7x
topology: tpu7x:2x2x1
jax: 0.10.0
libtpu: 0.0.40
codegen_flags: <defaults>
</compile_context>

<pallas_src>
import functools

import jax
import jax.numpy as jnp
from jax.experimental import pallas as pl
from jax.experimental.pallas import tpu as pltpu


# ---------------------------------------------------------------------------
# Fused kernel: cv1 (1x1 conv + BN + SiLU) -> cv2 (5x5 dw conv + BN + SiLU)
#               -> channel concat.  TB images packed per grid step.
# ---------------------------------------------------------------------------
def _ghostconv_fused_kernel(x_ref, w1_ref, b1_ref, coef_ref, b2_ref, o_ref, *,
                            W, TB, C_half, use_mxu):
    """Per-grid-step shapes (TB images packed on the sublane axis):
      x_ref:    (TB*C1, HW)       flattened NCHW input, HW = H*W on the lane axis
      w1_ref:   (TB*C_, TB*C1)    block-diag cv1 weights, BN scale pre-folded
      b1_ref:   (TB*C_, 1)        folded BN bias for cv1
      coef_ref: (25, TB*C_, HW)   per-tap coefficient = w2*bn2_scale*border_mask
      b2_ref:   (TB*C_, 1)        folded BN bias for cv2
      o_ref:    (TB, C2, HW)      per image: rows [0,C_) = cv1(x), [C_,C2) = cv2(cv1(x))
    """
    HW = x_ref.shape[-1]

    x = x_ref[...]                      # (TB*C1, HW), already f32
    w1 = w1_ref[...]                    # hoisted out of the loops
    b1 = b1_ref[...]
    b2 = b2_ref[...]

    # ---- cv1: 1x1 conv (BN scale folded into w1) ----
    if use_mxu:
        # Large channel counts: use the otherwise idle MXU.
        y = jnp.dot(w1, x, preferred_element_type=jnp.float32)
    else:
        # Tiny K: broadcast-FMAs on the VPU (MXU would be ~99% idle).
        K = x.shape[0]
        y = w1[:, 0:1] * x[0:1, :]
        for ci in range(1, K):
            y = y + w1[:, ci:ci + 1] * x[ci:ci + 1, :]
    y = y + b1
    y = y * jax.nn.sigmoid(y)           # SiLU -> cv1 output (first half)

    # ---- cv2: 5x5 depthwise 'same' conv via 25 XLU lane-rolls ----
    # z[c, p] = sum_k coef[k][c, p] * y[c, p + s_k]  with coef already holding
    # the (BN-scaled) tap weight * border mask, so each tap is 1 mul + 1 add.
    z = None
    for dy in range(5):
        for dx in range(5):
            k = dy * 5 + dx
            s = (dy - 2) * W + (dx - 2)            # flat source offset of this tap
            shifted = y if s == 0 else pltpu.roll(y, (-s) % HW, axis=1)
            term = shifted * coef_ref[k]
            z = term if z is None else z + term
    z = z + b2
    z = z * jax.nn.sigmoid(z)           # SiLU -> cv2 output (second half)

    # Fused concat: build the (TB, C2, HW) block in-register and issue a single
    # full-tile, sublane-aligned store (no masked partial stores).
    out = jnp.concatenate(
        [y.reshape(TB, C_half, HW), z.reshape(TB, C_half, HW)], axis=1)
    o_ref[...] = out.astype(o_ref.dtype)


def _border_masks(H, W):
    """(25, H*W) float32: mask[k=dy*5+dx] is 1 where (h+dy-2, w+dx-2) is in-image."""
    hh = jnp.arange(H, dtype=jnp.int32)[:, None]
    ww = jnp.arange(W, dtype=jnp.int32)[None, :]
    rows = []
    for dy in range(5):
        for dx in range(5):
            valid = ((hh + (dy - 2) >= 0) & (hh + (dy - 2) < H) &
                     (ww + (dx - 2) >= 0) & (ww + (dx - 2) < W))
            rows.append(valid.reshape(H * W))
    return jnp.stack(rows).astype(jnp.float32)


# ---------------------------------------------------------------------------
# Parameter construction (deterministic, synthetic) + GhostConv forward.
# ---------------------------------------------------------------------------
def _fold_bn(gamma, beta, mean, var, eps=1e-5):
    scale = gamma / jnp.sqrt(var + eps)
    bias = beta - mean * scale
    return scale, bias


def make_ghostconv_params(key, c1, c2):
    c_ = c2 // 2
    k1, k2 = jax.random.split(key)
    # cv1: Conv2d(c1, c_, 1, bias=False) -> weight (c_, c1, 1, 1); stored (c_, c1).
    w1 = jax.random.normal(k1, (c_, c1), jnp.float32) * (1.0 / jnp.sqrt(c1))
    # cv2: Conv2d(c_, c_, 5, groups=c_, bias=False) -> (c_, 1, 5, 5); stored (c_, 5, 5).
    w2 = jax.random.normal(k2, (c_, 5, 5), jnp.float32) * (1.0 / 5.0)
    idx = jnp.arange(c_, dtype=jnp.float32)
    bn1 = _fold_bn(1.0 + 0.02 * idx, 0.01 * idx, 0.1 * idx, 1.0 + 0.05 * idx)
    bn2 = _fold_bn(1.0 - 0.01 * idx, -0.02 * idx, 0.05 * idx, 1.0 + 0.03 * idx)
    return {"w1": w1, "w2": w2, "bn1": bn1, "bn2": bn2}


def ghostconv_forward(x_nchw, params):
    """GhostConv forward. Input/output are NCHW (PyTorch convention), k=1, s=1, g=1."""
    B, C1, H, W = x_nchw.shape
    C_ = params["w1"].shape[0]
    C2 = 2 * C_
    HW = H * W

    # ---- choose TB = images packed per grid step ----
    # (a) fill the 8-sublane vreg tile when C_ < 8, (b) grow to amortize the
    # ~0.35us per-grid-step overhead while staying under ~2 MiB per step.
    base_tb = max(1, 8 // C_) if C_ < 8 else 1
    tb = min(B, base_tb)
    while tb > 1 and B % tb != 0:
        tb -= 1
    per_img_bytes = 4 * (C1 + C2 + 25 * C_) * HW
    while (tb * 2 <= B) and (B % (tb * 2) == 0) and (tb * 2 * per_img_bytes <= (2 << 20)):
        tb *= 2
    grid = (B // tb,)

    # ---- fold BatchNorm into the weights host-side ----
    s1, b1 = params["bn1"]
    s2, b2 = params["bn2"]
    w1f = (params["w1"].astype(jnp.float32) * s1[:, None].astype(jnp.float32))   # (C_, C1)
    # Block-diagonal cv1 weights so TB packed images are one dense FMA/matmul.
    w1b = jnp.kron(jnp.eye(tb, dtype=jnp.float32), w1f)                           # (tb*C_, tb*C1)
    b1p = jnp.tile(b1.astype(jnp.float32), tb).reshape(tb * C_, 1)
    b2p = jnp.tile(b2.astype(jnp.float32), tb).reshape(tb * C_, 1)

    # cv2 per-tap coefficients: (BN-scaled) depthwise tap weight * border mask.
    w2f = (params["w2"].reshape(C_, 25).astype(jnp.float32) *
           s2[:, None].astype(jnp.float32))                                       # (C_, 25)
    masks = _border_masks(H, W)                                                    # (25, HW)
    coef = w2f.T[:, :, None] * masks[:, None, :]                                   # (25, C_, HW)
    coef = jnp.tile(coef, (1, tb, 1))                                              # (25, tb*C_, HW)

    # Packed, flattened input: (B*C1, HW) -- free reshape, no transpose.
    x_flat = x_nchw.reshape(B * C1, HW).astype(jnp.float32)

    # Explicit VMEM budget: double-buffered blocks + headroom, clamped to 48 MiB
    # (v7x has only 64 MiB/TC; v5e/v6e could go higher but never need it here).
    block_bytes = 4 * (tb * C1 * HW + tb * C2 * HW + 25 * tb * C_ * HW +
                       tb * C_ * (tb * C1 + 2))
    vmem_limit = int(min(48 * 1024 * 1024,
                         max(8 * 1024 * 1024, 2 * block_bytes + 4 * 1024 * 1024)))

    cost = pl.CostEstimate(
        flops=int(B * HW * (2 * C1 * C_ + 2 * 25 * C_ + 6 * C2)),
        transcendentals=int(2 * B * HW * C2),   # sigmoid ~ exp + reciprocal
        bytes_accessed=int(4 * (B * (C1 + C2) * HW + 25 * tb * C_ * HW +
                                tb * C_ * (tb * C1 + 2))),
    )

    kernel = functools.partial(
        _ghostconv_fused_kernel,
        W=W, TB=tb, C_half=C_, use_mxu=(tb * C1 >= 32))

    out = pl.pallas_call(
        kernel,
        out_shape=jax.ShapeDtypeStruct((B, C2, HW), jnp.float32),
        grid_spec=pltpu.PrefetchScalarGridSpec(
            num_scalar_prefetch=0,
            grid=grid,
            in_specs=[
                pl.BlockSpec((tb * C1, HW), lambda b: (b, 0)),        # x (TB packed images)
                pl.BlockSpec((tb * C_, tb * C1), lambda b: (0, 0)),   # w1 (block-diag, BN-folded)
                pl.BlockSpec((tb * C_, 1), lambda b: (0, 0)),         # bn1 bias
                pl.BlockSpec((25, tb * C_, HW), lambda b: (0, 0, 0)), # cv2 tap coefficients
                pl.BlockSpec((tb * C_, 1), lambda b: (0, 0)),         # bn2 bias
            ],
            out_specs=pl.BlockSpec((tb, C2, HW), lambda b: (b, 0, 0)),
        ),
        compiler_params=pltpu.CompilerParams(
            dimension_semantics=("parallel",),
            vmem_limit_bytes=vmem_limit,
        ),
        cost_estimate=cost,
    )(x_flat, w1b, b1p, coef, b2p)

    return out.reshape(B, C2, H, W)


# ---------------------------------------------------------------------------
# Pure-JAX (XLA) reference, for correctness checking only.
# ---------------------------------------------------------------------------
def _reference_ghostconv(x_nchw, params):
    w1 = params["w1"][:, :, None, None]          # (C_, C1, 1, 1) OIHW
    w2 = params["w2"][:, None, :, :]             # (C_, 1, 5, 5)  OIHW depthwise
    s1, b1 = params["bn1"]
    s2, b2 = params["bn2"]

    def conv_bn_silu(v, w, s, b, groups):
        out = jax.lax.conv_general_dilated(
            v, w, window_strides=(1, 1), padding="SAME",
            dimension_numbers=("NCHW", "OIHW", "NCHW"),
            feature_group_count=groups)
        out = out * s[None, :, None, None] + b[None, :, None, None]
        return out * jax.nn.sigmoid(out)

    y = conv_bn_silu(x_nchw, w1, s1, b1, 1)
    z = conv_bn_silu(y, w2, s2, b2, w2.shape[0])
    return jnp.concatenate([y, z], axis=1)


if __name__ == "__main__":
    B, C1, H, W = 2, 4, 16, 16
    C2 = 8  # -> c_ = 4
    key = jax.random.PRNGKey(0)
    kx, kp = jax.random.split(key)
    x = jax.random.normal(kx, (B, C1, H, W), jnp.float32)
    params = make_ghostconv_params(kp, C1, C2)

    fwd = jax.jit(ghostconv_forward)
    out = jax.block_until_ready(fwd(x, params))
    assert out.shape == (B, C2, H, W), out.shape

    ref = jax.block_until_ready(_reference_ghostconv(x, params))
    max_err = float(jnp.max(jnp.abs(out - ref)))
    assert max_err < 1e-4, f"mismatch vs reference: max abs err = {max_err}"
    print("KERNEL_OK")
</pallas_src>

<mosaic_0001>
module attributes {stable_mosaic.version = 11 : i64} {
  func.func @_ghostconv_fused_kernel(%arg0: i32, %arg1: memref<8x256xf32, #tpu.memory_space<vmem>>, %arg2: memref<8x8xf32, #tpu.memory_space<vmem>>, %arg3: memref<8x1xf32, #tpu.memory_space<vmem>>, %arg4: memref<25x8x256xf32, #tpu.memory_space<vmem>>, %arg5: memref<8x1xf32, #tpu.memory_space<vmem>>, %arg6: memref<2x8x256xf32, #tpu.memory_space<vmem>>) attributes {dimension_semantics = [#tpu.dimension_semantics<parallel>], iteration_bounds = array<i64: 1>, scalar_prefetch = 0 : i64, scratch_operands = 0 : i64, tpu.core_type = #tpu.core_type<tc>, window_params = [{transform_indices = @transform_0, window_bounds = array<i64: 8, 256>}, {pipeline_mode = #tpu.pipeline_mode<synchronous>, transform_indices = @transform_1, window_bounds = array<i64: 8, 8>}, {pipeline_mode = #tpu.pipeline_mode<synchronous>, transform_indices = @transform_2, window_bounds = array<i64: 8, 1>}, {pipeline_mode = #tpu.pipeline_mode<synchronous>, transform_indices = @transform_3, window_bounds = array<i64: 25, 8, 256>}, {pipeline_mode = #tpu.pipeline_mode<synchronous>, transform_indices = @transform_4, window_bounds = array<i64: 8, 1>}, {transform_indices = @transform_5, window_bounds = array<i64: 2, 8, 256>}]} {
    %c0 = arith.constant 0 : index
    %c0_0 = arith.constant 0 : index
    %0 = vector.load %arg1[%c0, %c0_0] : memref<8x256xf32, #tpu.memory_space<vmem>>, vector<8x256xf32>
    %c0_1 = arith.constant 0 : index
    %c0_2 = arith.constant 0 : index
    %1 = vector.load %arg2[%c0_1, %c0_2] : memref<8x8xf32, #tpu.memory_space<vmem>>, vector<8x8xf32>
    %c0_3 = arith.constant 0 : index
    %c0_4 = arith.constant 0 : index
    %2 = vector.load %arg3[%c0_3, %c0_4] : memref<8x1xf32, #tpu.memory_space<vmem>>, vector<8x1xf32>
    %c0_5 = arith.constant 0 : index
    %c0_6 = arith.constant 0 : index
    %3 = vector.load %arg5[%c0_5, %c0_6] : memref<8x1xf32, #tpu.memory_space<vmem>>, vector<8x1xf32>
    %4 = vector.extract_strided_slice %1 {offsets = [0, 0], sizes = [8, 1], strides = [1, 1]} : vector<8x8xf32> to vector<8x1xf32>
    %5 = vector.extract_strided_slice %0 {offsets = [0, 0], sizes = [1, 256], strides = [1, 1]} : vector<8x256xf32> to vector<1x256xf32>
    %6 = vector.broadcast %4 : vector<8x1xf32> to vector<8x256xf32>
    %7 = vector.broadcast %5 : vector<1x256xf32> to vector<8x256xf32>
    %8 = arith.mulf %6, %7 : vector<8x256xf32>
    %9 = vector.extract_strided_slice %1 {offsets = [0, 1], sizes = [8, 1], strides = [1, 1]} : vector<8x8xf32> to vector<8x1xf32>
    %10 = vector.extract_strided_slice %0 {offsets = [1, 0], sizes = [1, 256], strides = [1, 1]} : vector<8x256xf32> to vector<1x256xf32>
    %11 = vector.broadcast %9 : vector<8x1xf32> to vector<8x256xf32>
    %12 = vector.broadcast %10 : vector<1x256xf32> to vector<8x256xf32>
    %13 = arith.mulf %11, %12 : vector<8x256xf32>
    %14 = arith.addf %8, %13 : vector<8x256xf32>
    %15 = vector.extract_strided_slice %1 {offsets = [0, 2], sizes = [8, 1], strides = [1, 1]} : vector<8x8xf32> to vector<8x1xf32>
    %16 = vector.extract_strided_slice %0 {offsets = [2, 0], sizes = [1, 256], strides = [1, 1]} : vector<8x256xf32> to vector<1x256xf32>
    %17 = vector.broadcast %15 : vector<8x1xf32> to vector<8x256xf32>
    %18 = vector.broadcast %16 : vector<1x256xf32> to vector<8x256xf32>
    %19 = arith.mulf %17, %18 : vector<8x256xf32>
    %20 = arith.addf %14, %19 : vector<8x256xf32>
    %21 = vector.extract_strided_slice %1 {offsets = [0, 3], sizes = [8, 1], strides = [1, 1]} : vector<8x8xf32> to vector<8x1xf32>
    %22 = vector.extract_strided_slice %0 {offsets = [3, 0], sizes = [1, 256], strides = [1, 1]} : vector<8x256xf32> to vector<1x256xf32>
    %23 = vector.broadcast %21 : vector<8x1xf32> to vector<8x256xf32>
    %24 = vector.broadcast %22 : vector<1x256xf32> to vector<8x256xf32>
    %25 = arith.mulf %23, %24 : vector<8x256xf32>
    %26 = arith.addf %20, %25 : vector<8x256xf32>
    %27 = vector.extract_strided_slice %1 {offsets = [0, 4], sizes = [8, 1], strides = [1, 1]} : vector<8x8xf32> to vector<8x1xf32>
    %28 = vector.extract_strided_slice %0 {offsets = [4, 0], sizes = [1, 256], strides = [1, 1]} : vector<8x256xf32> to vector<1x256xf32>
    %29 = vector.broadcast %27 : vector<8x1xf32> to vector<8x256xf32>
    %30 = vector.broadcast %28 : vector<1x256xf32> to vector<8x256xf32>
    %31 = arith.mulf %29, %30 : vector<8x256xf32>
    %32 = arith.addf %26, %31 : vector<8x256xf32>
    %33 = vector.extract_strided_slice %1 {offsets = [0, 5], sizes = [8, 1], strides = [1, 1]} : vector<8x8xf32> to vector<8x1xf32>
    %34 = vector.extract_strided_slice %0 {offsets = [5, 0], sizes = [1, 256], strides = [1, 1]} : vector<8x256xf32> to vector<1x256xf32>
    %35 = vector.broadcast %33 : vector<8x1xf32> to vector<8x256xf32>
    %36 = vector.broadcast %34 : vector<1x256xf32> to vector<8x256xf32>
    %37 = arith.mulf %35, %36 : vector<8x256xf32>
    %38 = arith.addf %32, %37 : vector<8x256xf32>
    %39 = vector.extract_strided_slice %1 {offsets = [0, 6], sizes = [8, 1], strides = [1, 1]} : vector<8x8xf32> to vector<8x1xf32>
    %40 = vector.extract_strided_slice %0 {offsets = [6, 0], sizes = [1, 256], strides = [1, 1]} : vector<8x256xf32> to vector<1x256xf32>
    %41 = vector.broadcast %39 : vector<8x1xf32> to vector<8x256xf32>
    %42 = vector.broadcast %40 : vector<1x256xf32> to vector<8x256xf32>
    %43 = arith.mulf %41, %42 : vector<8x256xf32>
    %44 = arith.addf %38, %43 : vector<8x256xf32>
    %45 = vector.extract_strided_slice %1 {offsets = [0, 7], sizes = [8, 1], strides = [1, 1]} : vector<8x8xf32> to vector<8x1xf32>
    %46 = vector.extract_strided_slice %0 {offsets = [7, 0], sizes = [1, 256], strides = [1, 1]} : vector<8x256xf32> to vector<1x256xf32>
    %47 = vector.broadcast %45 : vector<8x1xf32> to vector<8x256xf32>
    %48 = vector.broadcast %46 : vector<1x256xf32> to vector<8x256xf32>
    %49 = arith.mulf %47, %48 : vector<8x256xf32>
    %50 = arith.addf %44, %49 : vector<8x256xf32>
    %51 = vector.broadcast %2 : vector<8x1xf32> to vector<8x256xf32>
    %52 = arith.addf %50, %51 : vector<8x256xf32>
    %53 = arith.negf %52 : vector<8x256xf32>
    %54 = math.exp %53 : vector<8x256xf32>
    %cst = arith.constant 1.000000e+00 : f32
    %55 = vector.broadcast %cst : f32 to vector<8x256xf32>
    %56 = arith.addf %55, %54 : vector<8x256xf32>
    %57 = arith.divf %55, %56 : vector<8x256xf32>
    %58 = arith.mulf %52, %57 : vector<8x256xf32>
    %c34_i32 = arith.constant 34 : i32
    %59 = tpu.dynamic_rotate %58 by %c34_i32 dim 1 : vector<8x256xf32>, i32 -> vector<8x256xf32>
    %c0_7 = arith.constant 0 : index
    %c0_8 = arith.constant 0 : index
    %c0_9 = arith.constant 0 : index
    %60 = vector.load %arg4[%c0_7, %c0_8, %c0_9] : memref<25x8x256xf32, #tpu.memory_space<vmem>>, vector<1x8x256xf32>
    %61 = vector.shape_cast %60 : vector<1x8x256xf32> to vector<8x256xf32>
    %62 = arith.mulf %59, %61 : vector<8x256xf32>
    %c33_i32 = arith.constant 33 : i32
    %63 = tpu.dynamic_rotate %58 by %c33_i32 dim 1 : vector<8x256xf32>, i32 -> vector<8x256xf32>
    %c1 = arith.constant 1 : index
    %c0_10 = arith.constant 0 : index
    %c0_11 = arith.constant 0 : index
    %64 = vector.load %arg4[%c1, %c0_10, %c0_11] : memref<25x8x256xf32, #tpu.memory_space<vmem>>, vector<1x8x256xf32>
    %65 = vector.shape_cast %64 : vector<1x8x256xf32> to vector<8x256xf32>
    %66 = arith.mulf %63, %65 : vector<8x256xf32>
    %67 = arith.addf %62, %66 : vector<8x256xf32>
    %c32_i32 = arith.constant 32 : i32
    %68 = tpu.dynamic_rotate %58 by %c32_i32 dim 1 : vector<8x256xf32>, i32 -> vector<8x256xf32>
    %c2 = arith.constant 2 : index
    %c0_12 = arith.constant 0 : index
    %c0_13 = arith.constant 0 : index
    %69 = vector.load %arg4[%c2, %c0_12, %c0_13] : memref<25x8x256xf32, #tpu.memory_space<vmem>>, vector<1x8x256xf32>
    %70 = vector.shape_cast %69 : vector<1x8x256xf32> to vector<8x256xf32>
    %71 = arith.mulf %68, %70 : vector<8x256xf32>
    %72 = arith.addf %67, %71 : vector<8x256xf32>
    %c31_i32 = arith.constant 31 : i32
    %73 = tpu.dynamic_rotate %58 by %c31_i32 dim 1 : vector<8x256xf32>, i32 -> vector<8x256xf32>
    %c3 = arith.constant 3 : index
    %c0_14 = arith.constant 0 : index
    %c0_15 = arith.constant 0 : index
    %74 = vector.load %arg4[%c3, %c0_14, %c0_15] : memref<25x8x256xf32, #tpu.memory_space<vmem>>, vector<1x8x256xf32>
    %75 = vector.shape_cast %74 : vector<1x8x256xf32> to vector<8x256xf32>
    %76 = arith.mulf %73, %75 : vector<8x256xf32>
    %77 = arith.addf %72, %76 : vector<8x256xf32>
    %c30_i32 = arith.constant 30 : i32
    %78 = tpu.dynamic_rotate %58 by %c30_i32 dim 1 : vector<8x256xf32>, i32 -> vector<8x256xf32>
    %c4 = arith.constant 4 : index
    %c0_16 = arith.constant 0 : index
    %c0_17 = arith.constant 0 : index
    %79 = vector.load %arg4[%c4, %c0_16, %c0_17] : memref<25x8x256xf32, #tpu.memory_space<vmem>>, vector<1x8x256xf32>
    %80 = vector.shape_cast %79 : vector<1x8x256xf32> to vector<8x256xf32>
    %81 = arith.mulf %78, %80 : vector<8x256xf32>
    %82 = arith.addf %77, %81 : vector<8x256xf32>
    %c18_i32 = arith.constant 18 : i32
    %83 = tpu.dynamic_rotate %58 by %c18_i32 dim 1 : vector<8x256xf32>, i32 -> vector<8x256xf32>
    %c5 = arith.constant 5 : index
    %c0_18 = arith.constant 0 : index
    %c0_19 = arith.constant 0 : index
    %84 = vector.load %arg4[%c5, %c0_18, %c0_19] : memref<25x8x256xf32, #tpu.memory_space<vmem>>, vector<1x8x256xf32>
    %85 = vector.shape_cast %84 : vector<1x8x256xf32> to vector<8x256xf32>
    %86 = arith.mulf %83, %85 : vector<8x256xf32>
    %87 = arith.addf %82, %86 : vector<8x256xf32>
    %c17_i32 = arith.constant 17 : i32
    %88 = tpu.dynamic_rotate %58 by %c17_i32 dim 1 : vector<8x256xf32>, i32 -> vector<8x256xf32>
    %c6 = arith.constant 6 : index
    %c0_20 = arith.constant 0 : index
    %c0_21 = arith.constant 0 : index
    %89 = vector.load %arg4[%c6, %c0_20, %c0_21] : memref<25x8x256xf32, #tpu.memory_space<vmem>>, vector<1x8x256xf32>
    %90 = vector.shape_cast %89 : vector<1x8x256xf32> to vector<8x256xf32>
    %91 = arith.mulf %88, %90 : vector<8x256xf32>
    %92 = arith.addf %87, %91 : vector<8x256xf32>
    %c16_i32 = arith.constant 16 : i32
    %93 = tpu.dynamic_rotate %58 by %c16_i32 dim 1 : vector<8x256xf32>, i32 -> vector<8x256xf32>
    %c7 = arith.constant 7 : index
    %c0_22 = arith.constant 0 : index
    %c0_23 = arith.constant 0 : index
    %94 = vector.load %arg4[%c7, %c0_22, %c0_23] : memref<25x8x256xf32, #tpu.memory_space<vmem>>, vector<1x8x256xf32>
    %95 = vector.shape_cast %94 : vector<1x8x256xf32> to vector<8x256xf32>
    %96 = arith.mulf %93, %95 : vector<8x256xf32>
    %97 = arith.addf %92, %96 : vector<8x256xf32>
    %c15_i32 = arith.constant 15 : i32
    %98 = tpu.dynamic_rotate %58 by %c15_i32 dim 1 : vector<8x256xf32>, i32 -> vector<8x256xf32>
    %c8 = arith.constant 8 : index
    %c0_24 = arith.constant 0 : index
    %c0_25 = arith.constant 0 : index
    %99 = vector.load %arg4[%c8, %c0_24, %c0_25] : memref<25x8x256xf32, #tpu.memory_space<vmem>>, vector<1x8x256xf32>
    %100 = vector.shape_cast %99 : vector<1x8x256xf32> to vector<8x256xf32>
    %101 = arith.mulf %98, %100 : vector<8x256xf32>
    %102 = arith.addf %97, %101 : vector<8x256xf32>
    %c14_i32 = arith.constant 14 : i32
    %103 = tpu.dynamic_rotate %58 by %c14_i32 dim 1 : vector<8x256xf32>, i32 -> vector<8x256xf32>
    %c9 = arith.constant 9 : index
    %c0_26 = arith.constant 0 : index
    %c0_27 = arith.constant 0 : index
    %104 = vector.load %arg4[%c9, %c0_26, %c0_27] : memref<25x8x256xf32, #tpu.memory_space<vmem>>, vector<1x8x256xf32>
    %105 = vector.shape_cast %104 : vector<1x8x256xf32> to vector<8x256xf32>
    %106 = arith.mulf %103, %105 : vector<8x256xf32>
    %107 = arith.addf %102, %106 : vector<8x256xf32>
    %c2_i32 = arith.constant 2 : i32
    %108 = tpu.dynamic_rotate %58 by %c2_i32 dim 1 : vector<8x256xf32>, i32 -> vector<8x256xf32>
    %c10 = arith.constant 10 : index
    %c0_28 = arith.constant 0 : index
    %c0_29 = arith.constant 0 : index
    %109 = vector.load %arg4[%c10, %c0_28, %c0_29] : memref<25x8x256xf32, #tpu.memory_space<vmem>>, vector<1x8x256xf32>
    %110 = vector.shape_cast %109 : vector<1x8x256xf32> to vector<8x256xf32>
    %111 = arith.mulf %108, %110 : vector<8x256xf32>
    %112 = arith.addf %107, %111 : vector<8x256xf32>
    %c1_i32 = arith.constant 1 : i32
    %113 = tpu.dynamic_rotate %58 by %c1_i32 dim 1 : vector<8x256xf32>, i32 -> vector<8x256xf32>
    %c11 = arith.constant 11 : index
    %c0_30 = arith.constant 0 : index
    %c0_31 = arith.constant 0 : index
    %114 = vector.load %arg4[%c11, %c0_30, %c0_31] : memref<25x8x256xf32, #tpu.memory_space<vmem>>, vector<1x8x256xf32>
    %115 = vector.shape_cast %114 : vector<1x8x256xf32> to vector<8x256xf32>
    %116 = arith.mulf %113, %115 : vector<8x256xf32>
    %117 = arith.addf %112, %116 : vector<8x256xf32>
    %c12 = arith.constant 12 : index
    %c0_32 = arith.constant 0 : index
    %c0_33 = arith.constant 0 : index
    %118 = vector.load %arg4[%c12, %c0_32, %c0_33] : memref<25x8x256xf32, #tpu.memory_space<vmem>>, vector<1x8x256xf32>
    %119 = vector.shape_cast %118 : vector<1x8x256xf32> to vector<8x256xf32>
    %120 = arith.mulf %58, %119 : vector<8x256xf32>
    %121 = arith.addf %117, %120 : vector<8x256xf32>
    %c255_i32 = arith.constant 255 : i32
    %122 = tpu.dynamic_rotate %58 by %c255_i32 dim 1 : vector<8x256xf32>, i32 -> vector<8x256xf32>
    %c13 = arith.constant 13 : index
    %c0_34 = arith.constant 0 : index
    %c0_35 = arith.constant 0 : index
    %123 = vector.load %arg4[%c13, %c0_34, %c0_35] : memref<25x8x256xf32, #tpu.memory_space<vmem>>, vector<1x8x256xf32>
    %124 = vector.shape_cast %123 : vector<1x8x256xf32> to vector<8x256xf32>
    %125 = arith.mulf %122, %124 : vector<8x256xf32>
    %126 = arith.addf %121, %125 : vector<8x256xf32>
    %c254_i32 = arith.constant 254 : i32
    %127 = tpu.dynamic_rotate %58 by %c254_i32 dim 1 : vector<8x256xf32>, i32 -> vector<8x256xf32>
    %c14 = arith.constant 14 : index
    %c0_36 = arith.constant 0 : index
    %c0_37 = arith.constant 0 : index
    %128 = vector.load %arg4[%c14, %c0_36, %c0_37] : memref<25x8x256xf32, #tpu.memory_space<vmem>>, vector<1x8x256xf32>
    %129 = vector.shape_cast %128 : vector<1x8x256xf32> to vector<8x256xf32>
    %130 = arith.mulf %127, %129 : vector<8x256xf32>
    %131 = arith.addf %126, %130 : vector<8x256xf32>
    %c242_i32 = arith.constant 242 : i32
    %132 = tpu.dynamic_rotate %58 by %c242_i32 dim 1 : vector<8x256xf32>, i32 -> vector<8x256xf32>
    %c15 = arith.constant 15 : index
    %c0_38 = arith.constant 0 : index
    %c0_39 = arith.constant 0 : index
    %133 = vector.load %arg4[%c15, %c0_38, %c0_39] : memref<25x8x256xf32, #tpu.memory_space<vmem>>, vector<1x8x256xf32>
    %134 = vector.shape_cast %133 : vector<1x8x256xf32> to vector<8x256xf32>
    %135 = arith.mulf %132, %134 : vector<8x256xf32>
    %136 = arith.addf %131, %135 : vector<8x256xf32>
    %c241_i32 = arith.constant 241 : i32
    %137 = tpu.dynamic_rotate %58 by %c241_i32 dim 1 : vector<8x256xf32>, i32 -> vector<8x256xf32>
    %c16 = arith.constant 16 : index
    %c0_40 = arith.constant 0 : index
    %c0_41 = arith.constant 0 : index
    %138 = vector.load %arg4[%c16, %c0_40, %c0_41] : memref<25x8x256xf32, #tpu.memory_space<vmem>>, vector<1x8x256xf32>
    %139 = vector.shape_cast %138 : vector<1x8x256xf32> to vector<8x256xf32>
    %140 = arith.mulf %137, %139 : vector<8x256xf32>
    %141 = arith.addf %136, %140 : vector<8x256xf32>
    %c240_i32 = arith.constant 240 : i32
    %142 = tpu.dynamic_rotate %58 by %c240_i32 dim 1 : vector<8x256xf32>, i32 -> vector<8x256xf32>
    %c17 = arith.constant 17 : index
    %c0_42 = arith.constant 0 : index
    %c0_43 = arith.constant 0 : index
    %143 = vector.load %arg4[%c17, %c0_42, %c0_43] : memref<25x8x256xf32, #tpu.memory_space<vmem>>, vector<1x8x256xf32>
    %144 = vector.shape_cast %143 : vector<1x8x256xf32> to vector<8x256xf32>
    %145 = arith.mulf %142, %144 : vector<8x256xf32>
    %146 = arith.addf %141, %145 : vector<8x256xf32>
    %c239_i32 = arith.constant 239 : i32
    %147 = tpu.dynamic_rotate %58 by %c239_i32 dim 1 : vector<8x256xf32>, i32 -> vector<8x256xf32>
    %c18 = arith.constant 18 : index
    %c0_44 = arith.constant 0 : index
    %c0_45 = arith.constant 0 : index
    %148 = vector.load %arg4[%c18, %c0_44, %c0_45] : memref<25x8x256xf32, #tpu.memory_space<vmem>>, vector<1x8x256xf32>
    %149 = vector.shape_cast %148 : vector<1x8x256xf32> to vector<8x256xf32>
    %150 = arith.mulf %147, %149 : vector<8x256xf32>
    %151 = arith.addf %146, %150 : vector<8x256xf32>
    %c238_i32 = arith.constant 238 : i32
    %152 = tpu.dynamic_rotate %58 by %c238_i32 dim 1 : vector<8x256xf32>, i32 -> vector<8x256xf32>
    %c19 = arith.constant 19 : index
    %c0_46 = arith.constant 0 : index
    %c0_47 = arith.constant 0 : index
    %153 = vector.load %arg4[%c19, %c0_46, %c0_47] : memref<25x8x256xf32, #tpu.memory_space<vmem>>, vector<1x8x256xf32>
    %154 = vector.shape_cast %153 : vector<1x8x256xf32> to vector<8x256xf32>
    %155 = arith.mulf %152, %154 : vector<8x256xf32>
    %156 = arith.addf %151, %155 : vector<8x256xf32>
    %c226_i32 = arith.constant 226 : i32
    %157 = tpu.dynamic_rotate %58 by %c226_i32 dim 1 : vector<8x256xf32>, i32 -> vector<8x256xf32>
    %c20 = arith.constant 20 : index
    %c0_48 = arith.constant 0 : index
    %c0_49 = arith.constant 0 : index
    %158 = vector.load %arg4[%c20, %c0_48, %c0_49] : memref<25x8x256xf32, #tpu.memory_space<vmem>>, vector<1x8x256xf32>
    %159 = vector.shape_cast %158 : vector<1x8x256xf32> to vector<8x256xf32>
    %160 = arith.mulf %157, %159 : vector<8x256xf32>
    %161 = arith.addf %156, %160 : vector<8x256xf32>
    %c225_i32 = arith.constant 225 : i32
    %162 = tpu.dynamic_rotate %58 by %c225_i32 dim 1 : vector<8x256xf32>, i32 -> vector<8x256xf32>
    %c21 = arith.constant 21 : index
    %c0_50 = arith.constant 0 : index
    %c0_51 = arith.constant 0 : index
    %163 = vector.load %arg4[%c21, %c0_50, %c0_51] : memref<25x8x256xf32, #tpu.memory_space<vmem>>, vector<1x8x256xf32>
    %164 = vector.shape_cast %163 : vector<1x8x256xf32> to vector<8x256xf32>
    %165 = arith.mulf %162, %164 : vector<8x256xf32>
    %166 = arith.addf %161, %165 : vector<8x256xf32>
    %c224_i32 = arith.constant 224 : i32
    %167 = tpu.dynamic_rotate %58 by %c224_i32 dim 1 : vector<8x256xf32>, i32 -> vector<8x256xf32>
    %c22 = arith.constant 22 : index
    %c0_52 = arith.constant 0 : index
    %c0_53 = arith.constant 0 : index
    %168 = vector.load %arg4[%c22, %c0_52, %c0_53] : memref<25x8x256xf32, #tpu.memory_space<vmem>>, vector<1x8x256xf32>
    %169 = vector.shape_cast %168 : vector<1x8x256xf32> to vector<8x256xf32>
    %170 = arith.mulf %167, %169 : vector<8x256xf32>
    %171 = arith.addf %166, %170 : vector<8x256xf32>
    %c223_i32 = arith.constant 223 : i32
    %172 = tpu.dynamic_rotate %58 by %c223_i32 dim 1 : vector<8x256xf32>, i32 -> vector<8x256xf32>
    %c23 = arith.constant 23 : index
    %c0_54 = arith.constant 0 : index
    %c0_55 = arith.constant 0 : index
    %173 = vector.load %arg4[%c23, %c0_54, %c0_55] : memref<25x8x256xf32, #tpu.memory_space<vmem>>, vector<1x8x256xf32>
    %174 = vector.shape_cast %173 : vector<1x8x256xf32> to vector<8x256xf32>
    %175 = arith.mulf %172, %174 : vector<8x256xf32>
    %176 = arith.addf %171, %175 : vector<8x256xf32>
    %c222_i32 = arith.constant 222 : i32
    %177 = tpu.dynamic_rotate %58 by %c222_i32 dim 1 : vector<8x256xf32>, i32 -> vector<8x256xf32>
    %c24 = arith.constant 24 : index
    %c0_56 = arith.constant 0 : index
    %c0_57 = arith.constant 0 : index
    %178 = vector.load %arg4[%c24, %c0_56, %c0_57] : memref<25x8x256xf32, #tpu.memory_space<vmem>>, vector<1x8x256xf32>
    %179 = vector.shape_cast %178 : vector<1x8x256xf32> to vector<8x256xf32>
    %180 = arith.mulf %177, %179 : vector<8x256xf32>
    %181 = arith.addf %176, %180 : vector<8x256xf32>
    %182 = vector.broadcast %3 : vector<8x1xf32> to vector<8x256xf32>
    %183 = arith.addf %181, %182 : vector<8x256xf32>
    %184 = arith.negf %183 : vector<8x256xf32>
    %185 = math.exp %184 : vector<8x256xf32>
    %cst_58 = arith.constant 1.000000e+00 : f32
    %186 = vector.broadcast %cst_58 : f32 to vector<8x256xf32>
    %187 = arith.addf %186, %185 : vector<8x256xf32>
    %188 = arith.divf %186, %187 : vector<8x256xf32>
    %189 = arith.mulf %183, %188 : vector<8x256xf32>
    %190 = vector.shape_cast %58 : vector<8x256xf32> to vector<2x4x256xf32>
    %191 = vector.shape_cast %189 : vector<8x256xf32> to vector<2x4x256xf32>
    %192 = tpu.concatenate %190, %191 in 1 : vector<2x4x256xf32>, vector<2x4x256xf32> -> vector<2x8x256xf32>
    %c0_59 = arith.constant 0 : index
    %c0_60 = arith.constant 0 : index
    %c0_61 = arith.constant 0 : index
    %193 = vector.load %arg6[%c0_59, %c0_60, %c0_61] : memref<2x8x256xf32, #tpu.memory_space<vmem>>, vector<2x8x256xf32>
    tpu.vector_store %arg6[%c0_59, %c0_60, %c0_61], %192 {strides = array<i32>} : memref<2x8x256xf32, #tpu.memory_space<vmem>>, vector<2x8x256xf32>,
    return
  }
  func.func @transform_0(%arg0: i32) -> (i32, i32) {
    %c0_i32 = arith.constant 0 : i32
    %c0_i32_0 = arith.constant 0 : i32
    return %arg0, %c0_i32 : i32, i32
  }
  func.func @transform_1(%arg0: i32) -> (i32, i32) {
    %c0_i32 = arith.constant 0 : i32
    %c0_i32_0 = arith.constant 0 : i32
    %c0_i32_1 = arith.constant 0 : i32
    return %c0_i32, %c0_i32_0 : i32, i32
  }
  func.func @transform_2(%arg0: i32) -> (i32, i32) {
    %c0_i32 = arith.constant 0 : i32
    %c0_i32_0 = arith.constant 0 : i32
    %c0_i32_1 = arith.constant 0 : i32
    return %c0_i32, %c0_i32_0 : i32, i32
  }
  func.func @transform_3(%arg0: i32) -> (i32, i32, i32) {
    %c0_i32 = arith.constant 0 : i32
    %c0_i32_0 = arith.constant 0 : i32
    %c0_i32_1 = arith.constant 0 : i32
    %c0_i32_2 = arith.constant 0 : i32
    return %c0_i32, %c0_i32_0, %c0_i32_1 : i32, i32, i32
  }
  func.func @transform_4(%arg0: i32) -> (i32, i32) {
    %c0_i32 = arith.constant 0 : i32
    %c0_i32_0 = arith.constant 0 : i32
    %c0_i32_1 = arith.constant 0 : i32
    return %c0_i32, %c0_i32_0 : i32, i32
  }
  func.func @transform_5(%arg0: i32) -> (i32, i32, i32) {
    %c0_i32 = arith.constant 0 : i32
    %c0_i32_0 = arith.constant 0 : i32
    %c0_i32_1 = arith.constant 0 : i32
    return %arg0, %c0_i32, %c0_i32_0 : i32, i32, i32
  }
}

</mosaic_0001>

<bundles_post_ra>
// kernel: tile.29
= control target key start
LH: loop header
LB: loop body
LE: loop exit
PB: predicated region body
PF: predicated region fallthrough
CT: control target
= control target key end

     0   :  { %s1804_s0 = inlined_call_operand.vmem [shape: f32[25,2,4,256], index: 0, kind: input, shape index: {}]   ;;  %s1805_s1 = inlined_call_operand.vmem [shape: f32[25,8,256], index: 1, kind: output, shape index: {}]  }
   0x1   :  { %v996_v0 = vld [vmem:[%s1804_s0 + $0x18c] sm:$0xf]  ;;  %v997_v1 = vld [vmem:[%s1804_s0 + $0x188] sm:$0xf]  ;;  %v998_v2 = vld [vmem:[%s1804_s0 + $0x184] sm:$0xf] }
   0x2   :  { %8 = vst [vmem:[#allocation0 + $0x318] sm:$0xf] %v996_v0  ;;  %13 = vst [vmem:[#allocation0 + $0x310] sm:$0xf] %v997_v1  ;;  %v999_v3 = vld [vmem:[%s1804_s0 + $0x180] sm:$0xf] }
   0x3   :  { %18 = vst [vmem:[#allocation0 + $0x308] sm:$0xf] %v998_v2  ;;  %v1000_v4 = vld [vmem:[%s1804_s0 + $0x17c] sm:$0xf]  ;;  %v1001_v5 = vld [vmem:[%s1804_s0 + $0x178] sm:$0xf] }
   0x4   :  { %23 = vst [vmem:[#allocation0 + $0x300] sm:$0xf] %v999_v3  ;;  %28 = vst [vmem:[#allocation0 + $0x2f8] sm:$0xf] %v1000_v4  ;;  %v1002_v6 = vld [vmem:[%s1804_s0 + $0x174] sm:$0xf] }
   0x5   :  { %33 = vst [vmem:[#allocation0 + $0x2f0] sm:$0xf] %v1001_v5  ;;  %v1003_v7 = vld [vmem:[%s1804_s0 + $0x170] sm:$0xf]  ;;  %v1004_v8 = vld [vmem:[%s1804_s0 + $0x16c] sm:$0xf] }
   0x6   :  { %38 = vst [vmem:[#allocation0 + $0x2e8] sm:$0xf] %v1002_v6  ;;  %43 = vst [vmem:[#allocation0 + $0x2e0] sm:$0xf] %v1003_v7  ;;  %v1005_v9 = vld [vmem:[%s1804_s0 + $0x168] sm:$0xf] }
   0x7   :  { %48 = vst [vmem:[#allocation0 + $0x2d8] sm:$0xf] %v1004_v8  ;;  %v1006_v10 = vld [vmem:[%s1804_s0 + $0x164] sm:$0xf]  ;;  %v1007_v11 = vld [vmem:[%s1804_s0 + $0x160] sm:$0xf] }
   0x8   :  { %53 = vst [vmem:[#allocation0 + $0x2d0] sm:$0xf] %v1005_v9  ;;  %58 = vst [vmem:[#allocation0 + $0x2c8] sm:$0xf] %v1006_v10  ;;  %v1008_v12 = vld [vmem:[%s1804_s0 + $0x15c] sm:$0xf] }
   0x9   :  { %63 = vst [vmem:[#allocation0 + $0x2c0] sm:$0xf] %v1007_v11  ;;  %v1009_v13 = vld [vmem:[%s1804_s0 + $0x158] sm:$0xf]  ;;  %v1010_v14 = vld [vmem:[%s1804_s0 + $0x154] sm:$0xf] }
   0xa   :  { %68 = vst [vmem:[#allocation0 + $0x2b8] sm:$0xf] %v1008_v12  ;;  %73 = vst [vmem:[#allocation0 + $0x2b0] sm:$0xf] %v1009_v13  ;;  %v1011_v15 = vld [vmem:[%s1804_s0 + $0x150] sm:$0xf] }
   0xb   :  { %78 = vst [vmem:[#allocation0 + $0x2a8] sm:$0xf] %v1010_v14  ;;  %v1012_v16 = vld [vmem:[%s1804_s0 + $0x14c] sm:$0xf]  ;;  %v1013_v17 = vld [vmem:[%s1804_s0 + $0x148] sm:$0xf] }
   0xc   :  { %83 = vst [vmem:[#allocation0 + $0x2a0] sm:$0xf] %v1011_v15  ;;  %88 = vst [vmem:[#allocation0 + $0x298] sm:$0xf] %v1012_v16  ;;  %v1014_v18 = vld [vmem:[%s1804_s0 + $0x144] sm:$0xf] }
   0xd   :  { %93 = vst [vmem:[#allocation0 + $0x290] sm:$0xf] %v1013_v17  ;;  %v1015_v19 = vld [vmem:[%s1804_s0 + $0x140] sm:$0xf]  ;;  %v1016_v20 = vld [vmem:[%s1804_s0 + $0x13c] sm:$0xf] }
   0xe   :  { %98 = vst [vmem:[#allocation0 + $0x288] sm:$0xf] %v1014_v18  ;;  %103 = vst [vmem:[#allocation0 + $0x280] sm:$0xf] %v1015_v19  ;;  %v1017_v21 = vld [vmem:[%s1804_s0 + $0x138] sm:$0xf] }
   0xf   :  { %108 = vst [vmem:[#allocation0 + $0x278] sm:$0xf] %v1016_v20  ;;  %v1018_v22 = vld [vmem:[%s1804_s0 + $0x134] sm:$0xf]  ;;  %v1019_v23 = vld [vmem:[%s1804_s0 + $0x130] sm:$0xf] }
  0x10   :  { %113 = vst [vmem:[#allocation0 + $0x270] sm:$0xf] %v1017_v21  ;;  %118 = vst [vmem:[#allocation0 + $0x268] sm:$0xf] %v1018_v22  ;;  %v1020_v24 = vld [vmem:[%s1804_s0 + $0x12c] sm:$0xf] }
  0x11   :  { %123 = vst [vmem:[#allocation0 + $0x260] sm:$0xf] %v1019_v23  ;;  %v1021_v25 = vld [vmem:[%s1804_s0 + $0x128] sm:$0xf]  ;;  %v1022_v26 = vld [vmem:[%s1804_s0 + $0x124] sm:$0xf] }
  0x12   :  { %128 = vst [vmem:[#allocation0 + $0x258] sm:$0xf] %v1020_v24  ;;  %133 = vst [vmem:[#allocation0 + $0x250] sm:$0xf] %v1021_v25  ;;  %v1023_v27 = vld [vmem:[%s1804_s0 + $0x120] sm:$0xf] }
  0x13   :  { %138 = vst [vmem:[#allocation0 + $0x248] sm:$0xf] %v1022_v26  ;;  %v1024_v28 = vld [vmem:[%s1804_s0 + $0x11c] sm:$0xf]  ;;  %v1025_v29 = vld [vmem:[%s1804_s0 + $0x118] sm:$0xf] }
  0x14   :  { %143 = vst [vmem:[#allocation0 + $0x240] sm:$0xf] %v1023_v27  ;;  %148 = vst [vmem:[#allocation0 + $0x238] sm:$0xf] %v1024_v28  ;;  %v1026_v30 = vld [vmem:[%s1804_s0 + $0x114] sm:$0xf] }
  0x15   :  { %153 = vst [vmem:[#allocation0 + $0x230] sm:$0xf] %v1025_v29  ;;  %v1027_v31 = vld [vmem:[%s1804_s0 + $0x110] sm:$0xf]  ;;  %v1028_v32 = vld [vmem:[%s1804_s0 + $0x10c] sm:$0xf] }
  0x16   :  { %158 = vst [vmem:[#allocation0 + $0x228] sm:$0xf] %v1026_v30  ;;  %163 = vst [vmem:[#allocation0 + $0x220] sm:$0xf] %v1027_v31  ;;  %v1029_v33 = vld [vmem:[%s1804_s0 + $0x108] sm:$0xf] }
  0x17   :  { %168 = vst [vmem:[#allocation0 + $0x218] sm:$0xf] %v1028_v32  ;;  %v1030_v34 = vld [vmem:[%s1804_s0 + $0x104] sm:$0xf]  ;;  %v1031_v35 = vld [vmem:[%s1804_s0 + $0x100] sm:$0xf] }
  0x18   :  { %173 = vst [vmem:[#allocation0 + $0x210] sm:$0xf] %v1029_v33  ;;  %178 = vst [vmem:[#allocation0 + $0x208] sm:$0xf] %v1030_v34  ;;  %v1032_v36 = vld [vmem:[%s1804_s0 + $0xfc] sm:$0xf] }
  0x19   :  { %183 = vst [vmem:[#allocation0 + $0x200] sm:$0xf] %v1031_v35  ;;  %v1033_v37 = vld [vmem:[%s1804_s0 + $0xf8] sm:$0xf]  ;;  %v1034_v38 = vld [vmem:[%s1804_s0 + $0xf4] sm:$0xf] }
  0x1a   :  { %188 = vst [vmem:[#allocation0 + $0x1f8] sm:$0xf] %v1032_v36  ;;  %193 = vst [vmem:[#allocation0 + $0x1f0] sm:$0xf] %v1033_v37  ;;  %v1035_v39 = vld [vmem:[%s1804_s0 + $0xf0] sm:$0xf] }
  0x1b   :  { %198 = vst [vmem:[#allocation0 + $0x1e8] sm:$0xf] %v1034_v38  ;;  %v1036_v40 = vld [vmem:[%s1804_s0 + $0xec] sm:$0xf]  ;;  %v1037_v41 = vld [vmem:[%s1804_s0 + $0xe8] sm:$0xf] }
  0x1c   :  { %203 = vst [vmem:[#allocation0 + $0x1e0] sm:$0xf] %v1035_v39  ;;  %208 = vst [vmem:[#allocation0 + $0x1d8] sm:$0xf] %v1036_v40  ;;  %v1038_v42 = vld [vmem:[%s1804_s0 + $0xe4] sm:$0xf] }
  0x1d   :  { %213 = vst [vmem:[#allocation0 + $0x1d0] sm:$0xf] %v1037_v41  ;;  %v1039_v43 = vld [vmem:[%s1804_s0 + $0xe0] sm:$0xf]  ;;  %v1040_v44 = vld [vmem:[%s1804_s0 + $0xdc] sm:$0xf] }
  0x1e   :  { %218 = vst [vmem:[#allocation0 + $0x1c8] sm:$0xf] %v1038_v42  ;;  %223 = vst [vmem:[#allocation0 + $0x1c0] sm:$0xf] %v1039_v43  ;;  %v1041_v45 = vld [vmem:[%s1804_s0 + $0xd8] sm:$0xf] }
  0x1f   :  { %228 = vst [vmem:[#allocation0 + $0x1b8] sm:$0xf] %v1040_v44  ;;  %v1042_v46 = vld [vmem:[%s1804_s0 + $0xd4] sm:$0xf]  ;;  %v1043_v47 = vld [vmem:[%s1804_s0 + $0xd0] sm:$0xf] }
  0x20   :  { %233 = vst [vmem:[#allocation0 + $0x1b0] sm:$0xf] %v1041_v45  ;;  %238 = vst [vmem:[#allocation0 + $0x1a8] sm:$0xf] %v1042_v46  ;;  %v1044_v48 = vld [vmem:[%s1804_s0 + $0xcc] sm:$0xf] }
  0x21   :  { %243 = vst [vmem:[#allocation0 + $0x1a0] sm:$0xf] %v1043_v47  ;;  %v1045_v49 = vld [vmem:[%s1804_s0 + $0xc8] sm:$0xf]  ;;  %v1046_v50 = vld [vmem:[%s1804_s0 + $0xc4] sm:$0xf] }
  0x22   :  { %248 = vst [vmem:[#allocation0 + $0x198] sm:$0xf] %v1044_v48  ;;  %253 = vst [vmem:[#allocation0 + $0x190] sm:$0xf] %v1045_v49  ;;  %v1047_v51 = vld [vmem:[%s1804_s0 + $0xc0] sm:$0xf] }
  0x23   :  { %258 = vst [vmem:[#allocation0 + $0x188] sm:$0xf] %v1046_v50  ;;  %v1048_v52 = vld [vmem:[%s1804_s0 + $0xbc] sm:$0xf]  ;;  %v1049_v53 = vld [vmem:[%s1804_s0 + $0xb8] sm:$0xf] }
  0x24   :  { %263 = vst [vmem:[#allocation0 + $0x180] sm:$0xf] %v1047_v51  ;;  %268 = vst [vmem:[#allocation0 + $0x178] sm:$0xf] %v1048_v52  ;;  %v1050_v54 = vld [vmem:[%s1804_s0 + $0xb4] sm:$0xf] }
  0x25   :  { %273 = vst [vmem:[#allocation0 + $0x170] sm:$0xf] %v1049_v53  ;;  %v1051_v55 = vld [vmem:[%s1804_s0 + $0xb0] sm:$0xf]  ;;  %v1052_v56 = vld [vmem:[%s1804_s0 + $0xac] sm:$0xf] }
  0x26   :  { %278 = vst [vmem:[#allocation0 + $0x168] sm:$0xf] %v1050_v54  ;;  %283 = vst [vmem:[#allocation0 + $0x160] sm:$0xf] %v1051_v55  ;;  %v1053_v57 = vld [vmem:[%s1804_s0 + $0xa8] sm:$0xf] }
  0x27   :  { %288 = vst [vmem:[#allocation0 + $0x158] sm:$0xf] %v1052_v56  ;;  %v1054_v58 = vld [vmem:[%s1804_s0 + $0xa4] sm:$0xf]  ;;  %v1055_v59 = vld [vmem:[%s1804_s0 + $0xa0] sm:$0xf] }
  0x28   :  { %293 = vst [vmem:[#allocation0 + $0x150] sm:$0xf] %v1053_v57  ;;  %298 = vst [vmem:[#allocation0 + $0x148] sm:$0xf] %v1054_v58  ;;  %v1056_v60 = vld [vmem:[%s1804_s0 + $0x9c] sm:$0xf] }
  0x29   :  { %303 = vst [vmem:[#allocation0 + $0x140] sm:$0xf] %v1055_v59  ;;  %v1057_v61 = vld [vmem:[%s1804_s0 + $0x98] sm:$0xf]  ;;  %v1058_v62 = vld [vmem:[%s1804_s0 + $0x94] sm:$0xf] }
  0x2a   :  { %308 = vst [vmem:[#allocation0 + $0x138] sm:$0xf] %v1056_v60  ;;  %313 = vst [vmem:[#allocation0 + $0x130] sm:$0xf] %v1057_v61  ;;  %v1059_v63 = vld [vmem:[%s1804_s0 + $0x90] sm:$0xf] }
  0x2b   :  { %318 = vst [vmem:[#allocation0 + $0x128] sm:$0xf] %v1058_v62  ;;  %v1060_v0 = vld [vmem:[%s1804_s0 + $0x8c] sm:$0xf]  ;;  %v1061_v1 = vld [vmem:[%s1804_s0 + $0x88] sm:$0xf] }
  0x2c   :  { %323 = vst [vmem:[#allocation0 + $0x120] sm:$0xf] %v1059_v63  ;;  %328 = vst [vmem:[#allocation0 + $0x118] sm:$0xf] %v1060_v0  ;;  %v1062_v2 = vld [vmem:[%s1804_s0 + $0x84] sm:$0xf] }
  0x2d   :  { %333 = vst [vmem:[#allocation0 + $0x110] sm:$0xf] %v1061_v1  ;;  %v1063_v3 = vld [vmem:[%s1804_s0 + $0x80] sm:$0xf]  ;;  %v1064_v4 = vld [vmem:[%s1804_s0 + $0x7c] sm:$0xf] }
  0x2e   :  { %338 = vst [vmem:[#allocation0 + $0x108] sm:$0xf] %v1062_v2  ;;  %343 = vst [vmem:[#allocation0 + $0x100] sm:$0xf] %v1063_v3  ;;  %v1065_v5 = vld [vmem:[%s1804_s0 + $0x78] sm:$0xf] }
  0x2f   :  { %348 = vst [vmem:[#allocation0 + $0xf8] sm:$0xf] %v1064_v4  ;;  %v1066_v6 = vld [vmem:[%s1804_s0 + $0x74] sm:$0xf]  ;;  %v1067_v7 = vld [vmem:[%s1804_s0 + $0x70] sm:$0xf] }
  0x30   :  { %353 = vst [vmem:[#allocation0 + $0xf0] sm:$0xf] %v1065_v5  ;;  %358 = vst [vmem:[#allocation0 + $0xe8] sm:$0xf] %v1066_v6  ;;  %v1068_v8 = vld [vmem:[%s1804_s0 + $0x6c] sm:$0xf] }
  0x31   :  { %363 = vst [vmem:[#allocation0 + $0xe0] sm:$0xf] %v1067_v7  ;;  %v1069_v9 = vld [vmem:[%s1804_s0 + $0x68] sm:$0xf]  ;;  %v1070_v10 = vld [vmem:[%s1804_s0 + $0x64] sm:$0xf] }
  0x32   :  { %368 = vst [vmem:[#allocation0 + $0xd8] sm:$0xf] %v1068_v8  ;;  %373 = vst [vmem:[#allocation0 + $0xd0] sm:$0xf] %v1069_v9  ;;  %v1071_v11 = vld [vmem:[%s1804_s0 + $0x60] sm:$0xf] }
  0x33   :  { %378 = vst [vmem:[#allocation0 + $0xc8] sm:$0xf] %v1070_v10  ;;  %v1072_v12 = vld [vmem:[%s1804_s0 + $0x5c] sm:$0xf]  ;;  %v1073_v13 = vld [vmem:[%s1804_s0 + $0x58] sm:$0xf] }
  0x34   :  { %383 = vst [vmem:[#allocation0 + $0xc0] sm:$0xf] %v1071_v11  ;;  %388 = vst [vmem:[#allocation0 + $0xb8] sm:$0xf] %v1072_v12  ;;  %v1074_v14 = vld [vmem:[%s1804_s0 + $0x54] sm:$0xf] }
  0x35   :  { %393 = vst [vmem:[#allocation0 + $0xb0] sm:$0xf] %v1073_v13  ;;  %v1075_v15 = vld [vmem:[%s1804_s0 + $0x50] sm:$0xf]  ;;  %v1076_v16 = vld [vmem:[%s1804_s0 + $0x4c] sm:$0xf] }
  0x36   :  { %398 = vst [vmem:[#allocation0 + $0xa8] sm:$0xf] %v1074_v14  ;;  %403 = vst [vmem:[#allocation0 + $0xa0] sm:$0xf] %v1075_v15  ;;  %v1077_v17 = vld [vmem:[%s1804_s0 + $0x48] sm:$0xf] }
  0x37   :  { %408 = vst [vmem:[#allocation0 + $0x98] sm:$0xf] %v1076_v16  ;;  %v1078_v18 = vld [vmem:[%s1804_s0 + $0x44] sm:$0xf]  ;;  %v1079_v19 = vld [vmem:[%s1804_s0 + $0x40] sm:$0xf] }
  0x38   :  { %413 = vst [vmem:[#allocation0 + $0x90] sm:$0xf] %v1077_v17  ;;  %418 = vst [vmem:[#allocation0 + $0x88] sm:$0xf] %v1078_v18  ;;  %v1080_v20 = vld [vmem:[%s1804_s0 + $0x3c] sm:$0xf] }
  0x39   :  { %423 = vst [vmem:[#allocation0 + $0x80] sm:$0xf] %v1079_v19  ;;  %v1081_v21 = vld [vmem:[%s1804_s0 + $0x38] sm:$0xf]  ;;  %v1082_v22 = vld [vmem:[%s1804_s0 + $0x34] sm:$0xf] }
  0x3a   :  { %428 = vst [vmem:[#allocation0 + $0x78] sm:$0xf] %v1080_v20  ;;  %433 = vst [vmem:[#allocation0 + $0x70] sm:$0xf] %v1081_v21  ;;  %v1083_v23 = vld [vmem:[%s1804_s0 + $0x30] sm:$0xf] }
  0x3b   :  { %438 = vst [vmem:[#allocation0 + $0x68] sm:$0xf] %v1082_v22  ;;  %v1084_v24 = vld [vmem:[%s1804_s0 + $0x2c] sm:$0xf]  ;;  %v1085_v25 = vld [vmem:[%s1804_s0 + $0x28] sm:$0xf] }
  0x3c   :  { %443 = vst [vmem:[#allocation0 + $0x60] sm:$0xf] %v1083_v23  ;;  %448 = vst [vmem:[#allocation0 + $0x58] sm:$0xf] %v1084_v24  ;;  %v1086_v26 = vld [vmem:[%s1804_s0 + $0x24] sm:$0xf] }
  0x3d   :  { %453 = vst [vmem:[#allocation0 + $0x50] sm:$0xf] %v1085_v25  ;;  %v1087_v27 = vld [vmem:[%s1804_s0 + $0x20] sm:$0xf]  ;;  %v1088_v28 = vld [vmem:[%s1804_s0 + $0x1c] sm:$0xf] }
  0x3e   :  { %458 = vst [vmem:[#allocation0 + $0x48] sm:$0xf] %v1086_v26  ;;  %463 = vst [vmem:[#allocation0 + $0x40] sm:$0xf] %v1087_v27  ;;  %v1089_v29 = vld [vmem:[%s1804_s0 + $0x18] sm:$0xf] }
  0x3f   :  { %468 = vst [vmem:[#allocation0 + $0x38] sm:$0xf] %v1088_v28  ;;  %v1090_v30 = vld [vmem:[%s1804_s0 + $0x14] sm:$0xf]  ;;  %v1091_v31 = vld [vmem:[%s1804_s0 + $0x10] sm:$0xf] }
  0x40   :  { %473 = vst [vmem:[#allocation0 + $0x30] sm:$0xf] %v1089_v29  ;;  %478 = vst [vmem:[#allocation0 + $0x28] sm:$0xf] %v1090_v30  ;;  %v1092_v32 = vld [vmem:[%s1804_s0 + $0xc] sm:$0xf] }
  0x41   :  { %483 = vst [vmem:[#allocation0 + $0x20] sm:$0xf] %v1091_v31  ;;  %v1093_v33 = vld [vmem:[%s1804_s0 + $0x8] sm:$0xf]  ;;  %v1094_v34 = vld [vmem:[%s1804_s0 + $0x4] sm:$0xf] }
  0x42   :  { %488 = vst [vmem:[#allocation0 + $0x18] sm:$0xf] %v1092_v32  ;;  %493 = vst [vmem:[#allocation0 + $0x10] sm:$0xf] %v1093_v33  ;;  %v498_v35 = vld [vmem:[%s1804_s0] sm:$0xf] }
  0x43   :  { %497 = vst [vmem:[#allocation0 + $0x8] sm:$0xf] %v1094_v34  ;;  %v587_v36 = vld [vmem:[#allocation0 + $0xb0] sm:$0xf]   ;;  %v591_v37 = vld [vmem:[#allocation0 + $0xb8] sm:$0xf]  }
  0x44   :  { %499 = vst [vmem:[#allocation0] sm:$0xf] %v498_v35  ;;  %v575_v38 = vld [vmem:[#allocation0 + $0x98] sm:$0xf]   ;;  %v579_v39 = vld [vmem:[#allocation0 + $0xa0] sm:$0xf]  }
  0x45   :  { %v583_v40 = vld [vmem:[#allocation0 + $0xa8] sm:$0xf]   ;;  %1116 = vst [vmem:[%s1805_s1 + $0x54] sm:$0xf] %v587_v36   ;;  %1117 = vst [vmem:[%s1805_s1 + $0x5c] sm:$0xf] %v591_v37  }
  0x46   :  { %v563_v41 = vld [vmem:[#allocation0 + $0x80] sm:$0xf]   ;;  %v567_v42 = vld [vmem:[#allocation0 + $0x88] sm:$0xf]   ;;  %v571_v43 = vld [vmem:[#allocation0 + $0x90] sm:$0xf]  }
  0x47   :  { %1113 = vst [vmem:[%s1805_s1 + $0x4c] sm:$0xf] %v575_v38   ;;  %1114 = vst [vmem:[%s1805_s1 + $0x50] sm:$0xf] %v579_v39   ;;  %v551_v44 = vld [vmem:[#allocation0 + $0x68] sm:$0xf]  }
  0x48   :  { %1115 = vst [vmem:[%s1805_s1 + $0x58] sm:$0xf] %v583_v40   ;;  %v555_v45 = vld [vmem:[#allocation0 + $0x70] sm:$0xf]   ;;  %v559_v46 = vld [vmem:[#allocation0 + $0x78] sm:$0xf]  }
  0x49   :  { %1110 = vst [vmem:[%s1805_s1 + $0x40] sm:$0xf] %v563_v41   ;;  %1111 = vst [vmem:[%s1805_s1 + $0x48] sm:$0xf] %v567_v42   ;;  %v539_v47 = vld [vmem:[#allocation0 + $0x50] sm:$0xf]  }
  0x4a   :  { %1112 = vst [vmem:[%s1805_s1 + $0x44] sm:$0xf] %v571_v43   ;;  %v543_v48 = vld [vmem:[#allocation0 + $0x58] sm:$0xf]   ;;  %v547_v49 = vld [vmem:[#allocation0 + $0x60] sm:$0xf]  }
  0x4b   :  { %1107 = vst [vmem:[%s1805_s1 + $0x38] sm:$0xf] %v551_v44   ;;  %1108 = vst [vmem:[%s1805_s1 + $0x34] sm:$0xf] %v555_v45   ;;  %v527_v50 = vld [vmem:[#allocation0 + $0x38] sm:$0xf]  }
  0x4c   :  { %1109 = vst [vmem:[%s1805_s1 + $0x3c] sm:$0xf] %v559_v46   ;;  %v531_v51 = vld [vmem:[#allocation0 + $0x40] sm:$0xf]   ;;  %v535_v52 = vld [vmem:[#allocation0 + $0x48] sm:$0xf]  }
  0x4d   :  { %1104 = vst [vmem:[%s1805_s1 + $0x24] sm:$0xf] %v539_v47   ;;  %1105 = vst [vmem:[%s1805_s1 + $0x2c] sm:$0xf] %v543_v48   ;;  %v515_v53 = vld [vmem:[#allocation0 + $0x20] sm:$0xf]  }
  0x4e   :  { %1106 = vst [vmem:[%s1805_s1 + $0x30] sm:$0xf] %v547_v49   ;;  %v519_v54 = vld [vmem:[#allocation0 + $0x28] sm:$0xf]   ;;  %v523_v55 = vld [vmem:[#allocation0 + $0x30] sm:$0xf]  }
  0x4f   :  { %1101 = vst [vmem:[%s1805_s1 + $0x1c] sm:$0xf] %v527_v50   ;;  %1102 = vst [vmem:[%s1805_s1 + $0x20] sm:$0xf] %v531_v51   ;;  %v503_v56 = vld [vmem:[#allocation0 + $0x8] sm:$0xf]  }
  0x50   :  { %1103 = vst [vmem:[%s1805_s1 + $0x28] sm:$0xf] %v535_v52   ;;  %v507_v57 = vld [vmem:[#allocation0 + $0x10] sm:$0xf]   ;;  %v511_v58 = vld [vmem:[#allocation0 + $0x18] sm:$0xf]  }
  0x51   :  { %1098 = vst [vmem:[%s1805_s1 + $0x10] sm:$0xf] %v515_v53   ;;  %1099 = vst [vmem:[%s1805_s1 + $0x18] sm:$0xf] %v519_v54   ;;  %v500_v59 = vld [vmem:[#allocation0] sm:$0xf]  }
  0x52   :  { %1100 = vst [vmem:[%s1805_s1 + $0x14] sm:$0xf] %v523_v55   ;;  %1095 = vst [vmem:[%s1805_s1 + $0x8] sm:$0xf] %v503_v56   ;;  %v595_v60 = vld [vmem:[#allocation0 + $0xc0] sm:$0xf]  }
  0x53   :  { %1096 = vst [vmem:[%s1805_s1 + $0x4] sm:$0xf] %v507_v57   ;;  %1097 = vst [vmem:[%s1805_s1 + $0xc] sm:$0xf] %v511_v58   ;;  %v599_v61 = vld [vmem:[#allocation0 + $0xc8] sm:$0xf]  }
  0x54   :  { %501 = vst [vmem:[%s1805_s1] sm:$0xf] %v500_v59   ;;  %1118 = vst [vmem:[%s1805_s1 + $0x60] sm:$0xf] %v595_v60   ;;  %v603_v62 = vld [vmem:[#allocation0 + $0xd0] sm:$0xf]  }
  0x55   :  { %1119 = vst [vmem:[%s1805_s1 + $0x68] sm:$0xf] %v599_v61   ;;  %v607_v63 = vld [vmem:[#allocation0 + $0xd8] sm:$0xf]   ;;  %v611_v0 = vld [vmem:[#allocation0 + $0xe0] sm:$0xf]  }
  0x56   :  { %1120 = vst [vmem:[%s1805_s1 + $0x64] sm:$0xf] %v603_v62   ;;  %1121 = vst [vmem:[%s1805_s1 + $0x6c] sm:$0xf] %v607_v63   ;;  %v615_v1 = vld [vmem:[#allocation0 + $0xe8] sm:$0xf]  }
  0x57   :  { %1122 = vst [vmem:[%s1805_s1 + $0x70] sm:$0xf] %v611_v0   ;;  %v619_v2 = vld [vmem:[#allocation0 + $0xf0] sm:$0xf]   ;;  %v623_v3 = vld [vmem:[#allocation0 + $0xf8] sm:$0xf]  }
  0x58   :  { %1123 = vst [vmem:[%s1805_s1 + $0x78] sm:$0xf] %v615_v1   ;;  %1124 = vst [vmem:[%s1805_s1 + $0x74] sm:$0xf] %v619_v2   ;;  %v627_v4 = vld [vmem:[#allocation0 + $0x100] sm:$0xf]  }
  0x59   :  { %1125 = vst [vmem:[%s1805_s1 + $0x7c] sm:$0xf] %v623_v3   ;;  %v631_v5 = vld [vmem:[#allocation0 + $0x108] sm:$0xf]   ;;  %v635_v6 = vld [vmem:[#allocation0 + $0x110] sm:$0xf]  }
  0x5a   :  { %1126 = vst [vmem:[%s1805_s1 + $0x80] sm:$0xf] %v627_v4   ;;  %1127 = vst [vmem:[%s1805_s1 + $0x88] sm:$0xf] %v631_v5   ;;  %v639_v7 = vld [vmem:[#allocation0 + $0x118] sm:$0xf]  }
  0x5b   :  { %1128 = vst [vmem:[%s1805_s1 + $0x84] sm:$0xf] %v635_v6   ;;  %v643_v8 = vld [vmem:[#allocation0 + $0x120] sm:$0xf]   ;;  %v647_v9 = vld [vmem:[#allocation0 + $0x128] sm:$0xf]  }
  0x5c   :  { %1129 = vst [vmem:[%s1805_s1 + $0x8c] sm:$0xf] %v639_v7   ;;  %1130 = vst [vmem:[%s1805_s1 + $0x90] sm:$0xf] %v643_v8   ;;  %v651_v10 = vld [vmem:[#allocation0 + $0x130] sm:$0xf]  }
  0x5d   :  { %1131 = vst [vmem:[%s1805_s1 + $0x98] sm:$0xf] %v647_v9   ;;  %v655_v11 = vld [vmem:[#allocation0 + $0x138] sm:$0xf]   ;;  %v659_v12 = vld [vmem:[#allocation0 + $0x140] sm:$0xf]  }
  0x5e   :  { %1132 = vst [vmem:[%s1805_s1 + $0x94] sm:$0xf] %v651_v10   ;;  %1133 = vst [vmem:[%s1805_s1 + $0x9c] sm:$0xf] %v655_v11   ;;  %v663_v13 = vld [vmem:[#allocation0 + $0x148] sm:$0xf]  }
  0x5f   :  { %1134 = vst [vmem:[%s1805_s1 + $0xa0] sm:$0xf] %v659_v12   ;;  %v667_v14 = vld [vmem:[#allocation0 + $0x150] sm:$0xf]   ;;  %v671_v15 = vld [vmem:[#allocation0 + $0x158] sm:$0xf]  }
  0x60   :  { %1135 = vst [vmem:[%s1805_s1 + $0xa8] sm:$0xf] %v663_v13   ;;  %1136 = vst [vmem:[%s1805_s1 + $0xa4] sm:$0xf] %v667_v14   ;;  %v675_v16 = vld [vmem:[#allocation0 + $0x160] sm:$0xf]  }
  0x61   :  { %1137 = vst [vmem:[%s1805_s1 + $0xac] sm:$0xf] %v671_v15   ;;  %v679_v17 = vld [vmem:[#allocation0 + $0x168] sm:$0xf]   ;;  %v683_v18 = vld [vmem:[#allocation0 + $0x170] sm:$0xf]  }
  0x62   :  { %1138 = vst [vmem:[%s1805_s1 + $0xb0] sm:$0xf] %v675_v16   ;;  %1139 = vst [vmem:[%s1805_s1 + $0xb8] sm:$0xf] %v679_v17   ;;  %v687_v19 = vld [vmem:[#allocation0 + $0x178] sm:$0xf]  }
  0x63   :  { %1140 = vst [vmem:[%s1805_s1 + $0xb4] sm:$0xf] %v683_v18   ;;  %v691_v20 = vld [vmem:[#allocation0 + $0x180] sm:$0xf]   ;;  %v695_v21 = vld [vmem:[#allocation0 + $0x188] sm:$0xf]  }
  0x64   :  { %1141 = vst [vmem:[%s1805_s1 + $0xbc] sm:$0xf] %v687_v19   ;;  %1142 = vst [vmem:[%s1805_s1 + $0xc0] sm:$0xf] %v691_v20   ;;  %v699_v22 = vld [vmem:[#allocation0 + $0x190] sm:$0xf]  }
  0x65   :  { %1143 = vst [vmem:[%s1805_s1 + $0xc8] sm:$0xf] %v695_v21   ;;  %v703_v23 = vld [vmem:[#allocation0 + $0x198] sm:$0xf]   ;;  %v707_v24 = vld [vmem:[#allocation0 + $0x1a0] sm:$0xf]  }
  0x66   :  { %1144 = vst [vmem:[%s1805_s1 + $0xc4] sm:$0xf] %v699_v22   ;;  %1145 = vst [vmem:[%s1805_s1 + $0xcc] sm:$0xf] %v703_v23   ;;  %v711_v25 = vld [vmem:[#allocation0 + $0x1a8] sm:$0xf]  }
  0x67   :  { %1146 = vst [vmem:[%s1805_s1 + $0xd0] sm:$0xf] %v707_v24   ;;  %v715_v26 = vld [vmem:[#allocation0 + $0x1b0] sm:$0xf]   ;;  %v719_v27 = vld [vmem:[#allocation0 + $0x1b8] sm:$0xf]  }
  0x68   :  { %1147 = vst [vmem:[%s1805_s1 + $0xd8] sm:$0xf] %v711_v25   ;;  %1148 = vst [vmem:[%s1805_s1 + $0xd4] sm:$0xf] %v715_v26   ;;  %v723_v28 = vld [vmem:[#allocation0 + $0x1c0] sm:$0xf]  }
  0x69   :  { %1149 = vst [vmem:[%s1805_s1 + $0xdc] sm:$0xf] %v719_v27   ;;  %v727_v29 = vld [vmem:[#allocation0 + $0x1c8] sm:$0xf]   ;;  %v731_v30 = vld [vmem:[#allocation0 + $0x1d0] sm:$0xf]  }
  0x6a   :  { %1150 = vst [vmem:[%s1805_s1 + $0xe0] sm:$0xf] %v723_v28   ;;  %1151 = vst [vmem:[%s1805_s1 + $0xe8] sm:$0xf] %v727_v29   ;;  %v735_v31 = vld [vmem:[#allocation0 + $0x1d8] sm:$0xf]  }
  0x6b   :  { %1152 = vst [vmem:[%s1805_s1 + $0xe4] sm:$0xf] %v731_v30   ;;  %v739_v32 = vld [vmem:[#allocation0 + $0x1e0] sm:$0xf]   ;;  %v743_v33 = vld [vmem:[#allocation0 + $0x1e8] sm:$0xf]  }
  0x6c   :  { %1153 = vst [vmem:[%s1805_s1 + $0xec] sm:$0xf] %v735_v31   ;;  %1154 = vst [vmem:[%s1805_s1 + $0xf0] sm:$0xf] %v739_v32   ;;  %v747_v34 = vld [vmem:[#allocation0 + $0x1f0] sm:$0xf]  }
  0x6d   :  { %1155 = vst [vmem:[%s1805_s1 + $0xf8] sm:$0xf] %v743_v33   ;;  %v751_v35 = vld [vmem:[#allocation0 + $0x1f8] sm:$0xf]   ;;  %v755_v36 = vld [vmem:[#allocation0 + $0x200] sm:$0xf]  }
  0x6e   :  { %1156 = vst [vmem:[%s1805_s1 + $0xf4] sm:$0xf] %v747_v34   ;;  %1157 = vst [vmem:[%s1805_s1 + $0xfc] sm:$0xf] %v751_v35   ;;  %v759_v37 = vld [vmem:[#allocation0 + $0x208] sm:$0xf]  }
  0x6f   :  { %1158 = vst [vmem:[%s1805_s1 + $0x100] sm:$0xf] %v755_v36   ;;  %v763_v38 = vld [vmem:[#allocation0 + $0x210] sm:$0xf]   ;;  %v767_v39 = vld [vmem:[#allocation0 + $0x218] sm:$0xf]  }
  0x70   :  { %1159 = vst [vmem:[%s1805_s1 + $0x108] sm:$0xf] %v759_v37   ;;  %1160 = vst [vmem:[%s1805_s1 + $0x104] sm:$0xf] %v763_v38   ;;  %v771_v40 = vld [vmem:[#allocation0 + $0x220] sm:$0xf]  }
  0x71   :  { %1161 = vst [vmem:[%s1805_s1 + $0x10c] sm:$0xf] %v767_v39   ;;  %v775_v41 = vld [vmem:[#allocation0 + $0x228] sm:$0xf]   ;;  %v779_v42 = vld [vmem:[#allocation0 + $0x230] sm:$0xf]  }
  0x72   :  { %1162 = vst [vmem:[%s1805_s1 + $0x110] sm:$0xf] %v771_v40   ;;  %1163 = vst [vmem:[%s1805_s1 + $0x118] sm:$0xf] %v775_v41   ;;  %v783_v43 = vld [vmem:[#allocation0 + $0x238] sm:$0xf]  }
  0x73   :  { %1164 = vst [vmem:[%s1805_s1 + $0x114] sm:$0xf] %v779_v42   ;;  %v787_v44 = vld [vmem:[#allocation0 + $0x240] sm:$0xf]   ;;  %v791_v45 = vld [vmem:[#allocation0 + $0x248] sm:$0xf]  }
  0x74   :  { %1165 = vst [vmem:[%s1805_s1 + $0x11c] sm:$0xf] %v783_v43   ;;  %1166 = vst [vmem:[%s1805_s1 + $0x120] sm:$0xf] %v787_v44   ;;  %v795_v46 = vld [vmem:[#allocation0 + $0x250] sm:$0xf]  }
  0x75   :  { %1167 = vst [vmem:[%s1805_s1 + $0x128] sm:$0xf] %v791_v45   ;;  %v799_v47 = vld [vmem:[#allocation0 + $0x258] sm:$0xf]   ;;  %v803_v48 = vld [vmem:[#allocation0 + $0x260] sm:$0xf]  }
  0x76   :  { %1168 = vst [vmem:[%s1805_s1 + $0x124] sm:$0xf] %v795_v46   ;;  %1169 = vst [vmem:[%s1805_s1 + $0x12c] sm:$0xf] %v799_v47   ;;  %v807_v49 = vld [vmem:[#allocation0 + $0x268] sm:$0xf]  }
  0x77   :  { %1170 = vst [vmem:[%s1805_s1 + $0x130] sm:$0xf] %v803_v48   ;;  %v811_v50 = vld [vmem:[#allocation0 + $0x270] sm:$0xf]   ;;  %v815_v51 = vld [vmem:[#allocation0 + $0x278] sm:$0xf]  }
  0x78   :  { %1171 = vst [vmem:[%s1805_s1 + $0x138] sm:$0xf] %v807_v49   ;;  %1172 = vst [vmem:[%s1805_s1 + $0x134] sm:$0xf] %v811_v50   ;;  %v819_v52 = vld [vmem:[#allocation0 + $0x280] sm:$0xf]  }
  0x79   :  { %1173 = vst [vmem:[%s1805_s1 + $0x13c] sm:$0xf] %v815_v51   ;;  %v823_v53 = vld [vmem:[#allocation0 + $0x288] sm:$0xf]   ;;  %v827_v54 = vld [vmem:[#allocation0 + $0x290] sm:$0xf]  }
  0x7a   :  { %1174 = vst [vmem:[%s1805_s1 + $0x140] sm:$0xf] %v819_v52   ;;  %1175 = vst [vmem:[%s1805_s1 + $0x148] sm:$0xf] %v823_v53   ;;  %v831_v55 = vld [vmem:[#allocation0 + $0x298] sm:$0xf]  }
  0x7b   :  { %1176 = vst [vmem:[%s1805_s1 + $0x144] sm:$0xf] %v827_v54   ;;  %v835_v56 = vld [vmem:[#allocation0 + $0x2a0] sm:$0xf]   ;;  %v839_v57 = vld [vmem:[#allocation0 + $0x2a8] sm:$0xf]  }
  0x7c   :  { %1177 = vst [vmem:[%s1805_s1 + $0x14c] sm:$0xf] %v831_v55   ;;  %1178 = vst [vmem:[%s1805_s1 + $0x150] sm:$0xf] %v835_v56   ;;  %v843_v58 = vld [vmem:[#allocation0 + $0x2b0] sm:$0xf]  }
  0x7d   :  { %1179 = vst [vmem:[%s1805_s1 + $0x158] sm:$0xf] %v839_v57   ;;  %v847_v59 = vld [vmem:[#allocation0 + $0x2b8] sm:$0xf]   ;;  %v851_v60 = vld [vmem:[#allocation0 + $0x2c0] sm:$0xf]  }
  0x7e   :  { %1180 = vst [vmem:[%s1805_s1 + $0x154] sm:$0xf] %v843_v58   ;;  %1181 = vst [vmem:[%s1805_s1 + $0x15c] sm:$0xf] %v847_v59   ;;  %v855_v61 = vld [vmem:[#allocation0 + $0x2c8] sm:$0xf]  }
  0x7f   :  { %1182 = vst [vmem:[%s1805_s1 + $0x160] sm:$0xf] %v851_v60   ;;  %v859_v62 = vld [vmem:[#allocation0 + $0x2d0] sm:$0xf]   ;;  %v863_v63 = vld [vmem:[#allocation0 + $0x2d8] sm:$0xf]  }
  0x80   :  { %1183 = vst [vmem:[%s1805_s1 + $0x168] sm:$0xf] %v855_v61   ;;  %1184 = vst [vmem:[%s1805_s1 + $0x164] sm:$0xf] %v859_v62   ;;  %v867_v0 = vld [vmem:[#allocation0 + $0x2e0] sm:$0xf]  }
  0x81   :  { %1185 = vst [vmem:[%s1805_s1 + $0x16c] sm:$0xf] %v863_v63   ;;  %v871_v1 = vld [vmem:[#allocation0 + $0x2e8] sm:$0xf]   ;;  %v875_v2 = vld [vmem:[#allocation0 + $0x2f0] sm:$0xf]  }
  0x82   :  { %1186 = vst [vmem:[%s1805_s1 + $0x170] sm:$0xf] %v867_v0   ;;  %1187 = vst [vmem:[%s1805_s1 + $0x178] sm:$0xf] %v871_v1   ;;  %v879_v3 = vld [vmem:[#allocation0 + $0x2f8] sm:$0xf]  }
  0x83   :  { %1188 = vst [vmem:[%s1805_s1 + $0x174] sm:$0xf] %v875_v2   ;;  %v883_v4 = vld [vmem:[#allocation0 + $0x300] sm:$0xf]   ;;  %v887_v5 = vld [vmem:[#allocation0 + $0x308] sm:$0xf]  }
  0x84   :  { %1189 = vst [vmem:[%s1805_s1 + $0x17c] sm:$0xf] %v879_v3   ;;  %1190 = vst [vmem:[%s1805_s1 + $0x180] sm:$0xf] %v883_v4   ;;  %v891_v6 = vld [vmem:[#allocation0 + $0x310] sm:$0xf]  }
  0x85   :  { %1191 = vst [vmem:[%s1805_s1 + $0x188] sm:$0xf] %v887_v5   ;;  %v895_v7 = vld [vmem:[#allocation0 + $0x318] sm:$0xf]   ;;  %1192 = vst [vmem:[%s1805_s1 + $0x184] sm:$0xf] %v891_v6  }
  0x86   :  { %1193 = vst [vmem:[%s1805_s1 + $0x18c] sm:$0xf] %v895_v7  }

// kernel: tile.18
= control target key start
LH: loop header
LB: loop body
LE: loop exit
PB: predicated region body
PF: predicated region fallthrough
CT: control target
= control target key end

     0   :  { %s22_s0 = inlined_call_operand.vmem [shape: f32[4], index: 0, kind: input, shape index: {}]   ;;  %s23_s1 = inlined_call_operand.vmem [shape: f32[2,4], index: 1, kind: output, shape index: {}]  }
   0x1   :  { %v4_v0 = vld [vmem:[%s22_s0] ss:$0 sm:$0xff] }
   0x2   :  { %5 = vst [vmem:[%s23_s1] sm:$0x3] %v4_v0 }

// kernel: tile.0
= control target key start
LH: loop header
LB: loop body
LE: loop exit
PB: predicated region body
PF: predicated region fallthrough
CT: control target
= control target key end

     0   :  { %s34_s8 = smov 125   ;;  %vm7_vm0 = vcmask 7168   ;;  %s35_s11 = smov 126   ;;  %s61_s0 = inlined_call_operand.vmem [shape: f32[2,4], index: 0, kind: input, shape index: {}]   ;;  %s62_s1 = inlined_call_operand.vmem [shape: f32[8,1], index: 1, kind: output, shape index: {}]  }
   0x1   :  { %v4_v0 = vld [vmem:[%s61_s0] sm:$0x3]  ;;  %s33_s0 = smov 127  }
   0x2   :  { %5 = vst [vmem:[#allocation0] sm:$0x3] %v4_v0 }
   0x9   :  { %v9_v1 = vld [vmem:[#allocation0] sm:$0x3]  }
   0xa   :  { %v21_v2 = vld [vmem:[#allocation0] sm:$0x3]   ;;  %10 = vrot.lane.b32.xlu0 %v9_v1, %s33_s0 }
   0xb   :  { %22 = vrot.lane.b32.xlu1 %v21_v2, %s34_s8  ;;  %v6_v3 = vld [vmem:[#allocation0] sm:$0x3]  }
   0xc   :  { %v15_v4 = vld [vmem:[#allocation0] sm:$0x3]   ;;  %8 = vst.msk [vmem:[%s62_s1] ss:$4 sm:$0x3] %vm7_vm0, %v6_v3  }
   0xe   :  { %16 = vrot.lane.b32.xlu0 %v15_v4, %s35_s11 }
  0x7c   :  { %v11_v5 = vpop.permute.xlu0 %10  }
  0x7d   :  { %v23_v6 = vpop.permute.xlu1 %22   ;;  %27 = vst.msk [vmem:[%s62_s1 + $0x1] ss:$4 sm:$0x3] %vm7_vm0, %v11_v5  }
  0x7e   :  { %29 = vst.msk [vmem:[%s62_s1 + $0x3] ss:$4 sm:$0x3] %vm7_vm0, %v23_v6  }
  0x80   :  { %v17_v7 = vpop.permute.xlu0 %16  }
  0x81   :  { %28 = vst.msk [vmem:[%s62_s1 + $0x2] ss:$4 sm:$0x3] %vm7_vm0, %v17_v7  }

// kernel: ghostconv_forward.1
= control target key start
LH: loop header
LB: loop body
LE: loop exit
PB: predicated region body
PF: predicated region fallthrough
CT: control target
= control target key end

     0   :  { %v682_v0 = vmov 2   ;;  %v683_v1 = vmov 0   ;;  %v684_v3 = vmov 3   ;;  %v685_v4 = vmov 1   ;;  %s692_s26 = smov 32   ;;  %s693_s27 = smov 31   ;;  %s1159_s1 = inlined_call_operand.vmem [shape: f32[8,8], index: 1, kind: input, shape index: {}]   ;;  %s1160_s2 = inlined_call_operand.vmem [shape: f32[8,1], index: 2, kind: input, shape index: {}]   ;;  %s1161_s4 = inlined_call_operand.vmem [shape: f32[8,1], index: 4, kind: input, shape index: {}]   ;;  %s1162_s0 = inlined_call_operand.vmem [shape: f32[8,256], index: 0, kind: input, shape index: {}]   ;;  %s1163_s3 = inlined_call_operand.vmem [shape: f32[25,8,256], index: 3, kind: input, shape index: {}]   ;;  %s1164_s5 = inlined_call_operand.vmem [shape: f32[2,8,256], index: 5, kind: output, shape index: {}]  }
   0x1   :  { %659 = vset.pattern.permute.xlu1 %v682_v0  ;;  %657 = vset.pattern.permute.xlu0 %v683_v1  ;;  %v22_v2 = vld [vmem:[%s1159_s1] sm:$0xff]  ;;  %v686_v5 = vmov 4   ;;  %v687_v6 = vmov 5   ;;  %v688_v8 = vmov 6   ;;  %v689_v10 = vmov 7   ;;  %v21_v19 = vld [vmem:[%s1162_s0 + $0x8] sm:$0xff] }
   0x2   :  { %57 = vperm.xlu1 %659, %v22_v2   ;;  %27 = vperm.xlu0 %657, %v22_v2   ;;  %v23_v7 = vld [vmem:[%s1160_s2] sm:$0xff]  ;;  %v30_v11 = vlaneseq  ;;  %s694_s28 = smov 30   ;;  %s695_s29 = smov 18  }
   0x3   :  { %v24_v9 = vld [vmem:[%s1161_s4] sm:$0xff]  ;;  %s691_s4 = smov 34   ;;  %s696_s30 = smov 17  }
   0x4   :  { %v31_v12 = vshrl.u32 %v30_v11, 7  ;;  %v20_v18 = vld [vmem:[%s1162_s0] sm:$0xff]  ;;  %s690_s0 = smov 33   ;;  %s697_s6 = smov 16  }
   0x5   :  { %s698_s7 = smov 15   ;;  %s699_s8 = smov 14  }
   0x6   :  { %660 = vset.pattern.permute.xlu1 %v684_v3  ;;  %658 = vset.pattern.permute.xlu0 %v685_v4  ;;  %v32_v13 = vsub.s32 0, %v31_v12  ;;  %v46_v14 = vsub.s32 1, %v31_v12  ;;  %v62_v15 = vsub.s32 2, %v31_v12  ;;  %v78_v20 = vsub.s32 3, %v31_v12  ;;  %s700_s9 = smov 2   ;;  %s701_s10 = smov 1  }
   0x7   :  { %73 = vperm.xlu1 %660, %v22_v2   ;;  %41 = vperm.xlu0 %658, %v22_v2   ;;  %v94_v25 = vsub.s32 4, %v31_v12  ;;  %v110_v32 = vsub.s32 5, %v31_v12  ;;  %v126_v45 = vsub.s32 6, %v31_v12  ;;  %v142_v56 = vsub.s32 7, %v31_v12  ;;  %s702_s11 = smov 127   ;;  %s703_s12 = smov 126  }
   0x8   :  { %v33_v21 = vrot.slane %v20_v18, %v32_v13  ;;  %v37_v22 = vrot.slane %v21_v19, %v32_v13  ;;  %v47_v23 = vrot.slane %v20_v18, %v46_v14  ;;  %v51_v24 = vrot.slane %v21_v19, %v46_v14  ;;  %s704_s13 = smov 114   ;;  %s705_s14 = smov 113  }
   0x9   :  { %v63_v26 = vrot.slane %v20_v18, %v62_v15  ;;  %v67_v27 = vrot.slane %v21_v19, %v62_v15  ;;  %v79_v29 = vrot.slane %v20_v18, %v78_v20  ;;  %v83_v30 = vrot.slane %v21_v19, %v78_v20  ;;  %s706_s15 = smov 112   ;;  %s707_s16 = smov 111  }
   0xa   :  { %v95_v37 = vrot.slane %v20_v18, %v94_v25  ;;  %v99_v38 = vrot.slane %v21_v19, %v94_v25  ;;  %v111_v43 = vrot.slane %v20_v18, %v110_v32  ;;  %v115_v44 = vrot.slane %v21_v19, %v110_v32  ;;  %s708_s17 = smov 110   ;;  %s709_s18 = smov 98  }
   0xb   :  { %661 = vset.pattern.permute.xlu1 %v686_v5  ;;  %662 = vset.pattern.permute.xlu0 %v687_v6  ;;  %v127_v59 = vrot.slane %v20_v18, %v126_v45  ;;  %v131_v60 = vrot.slane %v21_v19, %v126_v45  ;;  %v143_v0 = vrot.slane %v20_v18, %v142_v56  ;;  %s710_s19 = smov 97   ;;  %s711_s20 = smov 96  }
   0xc   :  { %89 = vperm.xlu1 %661, %v22_v2   ;;  %105 = vperm.xlu0 %662, %v22_v2   ;;  %s712_s21 = smov 95   ;;  %s713_s1 = smov 94  }
  0x10   :  { %663 = vset.pattern.permute.xlu1 %v688_v8  ;;  %665 = vset.pattern.permute.xlu0 %v683_v1  ;;  %v147_v1 = vrot.slane %v21_v19, %v142_v56 }
  0x11   :  { %121 = vperm.xlu1 %663, %v22_v2   ;;  %154 = vperm.xlu0 %665, %v23_v7  }
  0x15   :  { %664 = vset.pattern.permute.xlu1 %v689_v10  ;;  %517 = vperm.xlu0 %665, %v24_v9  }
  0x16   :  { %137 = vperm.xlu1 %664, %v22_v2  }
  0x81   :  { %v58_v16 = vpop.permute.xlu1 %57  ;;  %v28_v17 = vpop.permute.xlu0 %27 }
  0x82   :  { %v38_v33 = vmul.f32 %v33_v21, %v28_v17  ;;  %v39_v34 = vmul.f32 %v37_v22, %v28_v17  ;;  %v68_v39 = vmul.f32 %v63_v26, %v58_v16  ;;  %v69_v40 = vmul.f32 %v67_v27, %v58_v16 }
  0x86   :  { %v74_v28 = vpop.permute.xlu1 %73  ;;  %v42_v31 = vpop.permute.xlu0 %41 }
  0x87   :  { %v52_v35 = vmul.f32 %v47_v23, %v42_v31  ;;  %v53_v36 = vmul.f32 %v51_v24, %v42_v31  ;;  %v84_v46 = vmul.f32 %v79_v29, %v74_v28  ;;  %v85_v47 = vmul.f32 %v83_v30, %v74_v28 }
  0x89   :  { %v54_v41 = vadd.f32 %v52_v35, %v38_v33  ;;  %v55_v42 = vadd.f32 %v53_v36, %v39_v34 }
  0x8b   :  { %v70_v48 = vadd.f32 %v68_v39, %v54_v41  ;;  %v71_v49 = vadd.f32 %v69_v40, %v55_v42  ;;  %v90_v50 = vpop.permute.xlu1 %89  ;;  %v106_v51 = vpop.permute.xlu0 %105 }
  0x8c   :  { %v100_v52 = vmul.f32 %v95_v37, %v90_v50  ;;  %v101_v53 = vmul.f32 %v99_v38, %v90_v50  ;;  %v116_v57 = vmul.f32 %v111_v43, %v106_v51  ;;  %v117_v58 = vmul.f32 %v115_v44, %v106_v51  ;;  %v571_v51 = vld [vmem:[%s1163_s3 + $0x10] sm:$0xff] }
  0x8d   :  { %v86_v54 = vadd.f32 %v84_v46, %v70_v48  ;;  %v87_v55 = vadd.f32 %v85_v47, %v71_v49  ;;  %v831_v48 = vand.u32 127, %v30_v11 }
  0x8f   :  { %v102_v61 = vadd.f32 %v100_v52, %v86_v54  ;;  %v103_v62 = vadd.f32 %v101_v53, %v87_v55  ;;  %vm190_vm0 = vcmp.lt.s32.totalorder %v831_v48, 33  ;;  %vm179_vm1 = vcmp.lt.s32.totalorder %v831_v48, 34  ;;  %v572_v52 = vld [vmem:[%s1163_s3 + $0x18] sm:$0xff]  ;;  %v182_v54 = vld [vmem:[%s1163_s3] sm:$0xff] }
  0x90   :  { %v122_v63 = vpop.permute.xlu1 %121  ;;  %v155_v14 = vpop.permute.xlu0 %154  ;;  %vm204_vm2 = vcmp.lt.s32.totalorder %v831_v48, 32  ;;  %vm218_vm3 = vcmp.lt.s32.totalorder %v831_v48, 31  ;;  %vm232_vm4 = vcmp.lt.s32.totalorder %v831_v48, 30  ;;  %vm246_vm5 = vcmp.lt.s32.totalorder %v831_v48, 18 }
  0x91   :  { %v118_v2 = vadd.f32 %v116_v57, %v102_v61  ;;  %v119_v3 = vadd.f32 %v117_v58, %v103_v62  ;;  %v132_v4 = vmul.f32 %v127_v59, %v122_v63  ;;  %v133_v5 = vmul.f32 %v131_v60, %v122_v63  ;;  %v183_v57 = vld [vmem:[%s1163_s3 + $0x8] sm:$0xff]  ;;  %v573_v60 = vld [vmem:[%s1163_s3 + $0x20] sm:$0xff] }
  0x92   :  { %v574_v61 = vld [vmem:[%s1163_s3 + $0x28] sm:$0xff]  ;;  %vm260_vm6 = vcmp.lt.s32.totalorder %v831_v48, 17  ;;  %vm274_vm7 = vcmp.lt.s32.totalorder %v831_v48, 16  ;;  %vm288_vm8 = vcmp.lt.s32.totalorder %v831_v48, 15  ;;  %vm302_vm9 = vcmp.lt.s32.totalorder %v831_v48, 14 }
  0x93   :  { %v134_v7 = vadd.f32 %v132_v4, %v118_v2  ;;  %v135_v8 = vadd.f32 %v133_v5, %v119_v3  ;;  %v575_v2 = vld [vmem:[%s1163_s3 + $0x30] sm:$0xff]  ;;  %v576_v3 = vld [vmem:[%s1163_s3 + $0x38] sm:$0xff]  ;;  %vm316_vm10 = vcmp.lt.s32.totalorder %v831_v48, 2  ;;  %vm330_vm11 = vcmp.lt.s32.totalorder %v831_v48, 1 }
  0x94   :  { %v812_v27 = vpop.permute.xlu0 %517  ;;  %vm351_vm12 = vcmp.lt.s32.totalorder %v831_v48, 127  ;;  %vm365_vm13 = vcmp.lt.s32.totalorder %v831_v48, 126  ;;  %vm379_vm14 = vcmp.lt.s32.totalorder %v831_v48, 114  ;;  %vm393_vm15 = vcmp.lt.s32.totalorder %v831_v48, 113 }
  0x95   :  { %v138_v6 = vpop.permute.xlu1 %137 }
  0x96   :  { %v148_v9 = vmul.f32 %v143_v0, %v138_v6  ;;  %v149_v10 = vmul.f32 %v147_v1, %v138_v6 }
  0x98   :  { %v150_v13 = vadd.f32 %v148_v9, %v134_v7  ;;  %v151_v12 = vadd.f32 %v149_v10, %v135_v8 }
  0x9a   :  { %v157_v15 = vadd.f32 %v155_v14, %v150_v13  ;;  %v158_v16 = vadd.f32 %v155_v14, %v151_v12  ;;  %v577_v12 = vld [vmem:[%s1163_s3 + $0x40] sm:$0xff]  ;;  %v578_v14 = vld [vmem:[%s1163_s3 + $0x48] sm:$0xff] }
  0x9c   :  { %v569_v17 = vmul.f32 -1.442695, %v157_v15  ;;  %v570_v20 = vmul.f32 -1.442695, %v158_v16 }
  0x9e   :  { %666 = vpow2.f32 %v569_v17 }
  0x9f   :  { %668 = vpow2.f32 %v570_v20 }
  0xa8   :  { %v667_v18 = vpop.eup %666 }
  0xa9   :  { %v669_v19 = vpop.eup %668  ;;  %v165_v21 = vadd.f32 1.0, %v667_v18 }
  0xaa   :  { %v166_v22 = vadd.f32 1.0, %v669_v19 }
  0xab   :  { %670 = vrcp.f32 %v165_v21  ;;  %v579_v21 = vld [vmem:[%s1163_s3 + $0x50] sm:$0xff] }
  0xac   :  { %672 = vrcp.f32 %v166_v22  ;;  %v580_v22 = vld [vmem:[%s1163_s3 + $0x58] sm:$0xff] }
  0xb5   :  { %v671_v23 = vpop.eup %670 }
  0xb6   :  { %v760_v24 = vmul.f32 %v671_v23, %v157_v15  ;;  %v673_v25 = vpop.eup %672 }
  0xb7   :  { %v764_v26 = vmul.f32 %v673_v25, %v158_v16 }
  0xb8   :  { %186 = vrot.lane.b32.xlu0 %v760_v24, %s690_s0  ;;  %173 = vrot.lane.b32.xlu1 %v760_v24, %s691_s4 }
  0xbc   :  { %200 = vrot.lane.b32.xlu0 %v760_v24, %s692_s26  ;;  %175 = vrot.lane.b32.xlu1 %v764_v26, %s691_s4 }
  0xc0   :  { %214 = vrot.lane.b32.xlu0 %v760_v24, %s693_s27  ;;  %188 = vrot.lane.b32.xlu1 %v764_v26, %s690_s0 }
  0xc4   :  { %228 = vrot.lane.b32.xlu0 %v760_v24, %s694_s28  ;;  %202 = vrot.lane.b32.xlu1 %v764_v26, %s692_s26 }
  0xc8   :  { %242 = vrot.lane.b32.xlu0 %v760_v24, %s695_s29  ;;  %216 = vrot.lane.b32.xlu1 %v764_v26, %s693_s27 }
  0xcc   :  { %256 = vrot.lane.b32.xlu0 %v760_v24, %s696_s30  ;;  %230 = vrot.lane.b32.xlu1 %v764_v26, %s694_s28 }
  0xd0   :  { %270 = vrot.lane.b32.xlu0 %v760_v24, %s697_s6  ;;  %244 = vrot.lane.b32.xlu1 %v764_v26, %s695_s29 }
  0xd4   :  { %284 = vrot.lane.b32.xlu0 %v760_v24, %s698_s7  ;;  %258 = vrot.lane.b32.xlu1 %v764_v26, %s696_s30 }
  0xd8   :  { %298 = vrot.lane.b32.xlu0 %v760_v24, %s699_s8  ;;  %272 = vrot.lane.b32.xlu1 %v764_v26, %s697_s6 }
  0xdc   :  { %312 = vrot.lane.b32.xlu0 %v760_v24, %s700_s9  ;;  %286 = vrot.lane.b32.xlu1 %v764_v26, %s698_s7 }
  0xe0   :  { %326 = vrot.lane.b32.xlu0 %v760_v24, %s701_s10  ;;  %300 = vrot.lane.b32.xlu1 %v764_v26, %s699_s8 }
  0xe4   :  { %347 = vrot.lane.b32.xlu0 %v760_v24, %s702_s11  ;;  %314 = vrot.lane.b32.xlu1 %v764_v26, %s700_s9 }
  0xe8   :  { %361 = vrot.lane.b32.xlu0 %v760_v24, %s703_s12  ;;  %328 = vrot.lane.b32.xlu1 %v764_v26, %s701_s10 }
  0xec   :  { %375 = vrot.lane.b32.xlu0 %v760_v24, %s704_s13  ;;  %349 = vrot.lane.b32.xlu1 %v764_v26, %s702_s11 }
  0xf0   :  { %389 = vrot.lane.b32.xlu0 %v760_v24, %s705_s14  ;;  %363 = vrot.lane.b32.xlu1 %v764_v26, %s703_s12 }
  0xf4   :  { %403 = vrot.lane.b32.xlu0 %v760_v24, %s706_s15  ;;  %377 = vrot.lane.b32.xlu1 %v764_v26, %s704_s13 }
  0xf8   :  { %417 = vrot.lane.b32.xlu0 %v760_v24, %s707_s16  ;;  %391 = vrot.lane.b32.xlu1 %v764_v26, %s705_s14 }
  0xfc   :  { %431 = vrot.lane.b32.xlu0 %v760_v24, %s708_s17  ;;  %405 = vrot.lane.b32.xlu1 %v764_v26, %s706_s15 }
 0x100   :  { %445 = vrot.lane.b32.xlu0 %v760_v24, %s709_s18  ;;  %419 = vrot.lane.b32.xlu1 %v764_v26, %s707_s16 }
 0x104   :  { %459 = vrot.lane.b32.xlu0 %v760_v24, %s710_s19  ;;  %433 = vrot.lane.b32.xlu1 %v764_v26, %s708_s17 }
 0x108   :  { %473 = vrot.lane.b32.xlu0 %v760_v24, %s711_s20  ;;  %447 = vrot.lane.b32.xlu1 %v764_v26, %s709_s18 }
 0x10c   :  { %487 = vrot.lane.b32.xlu0 %v760_v24, %s712_s21  ;;  %461 = vrot.lane.b32.xlu1 %v764_v26, %s710_s19 }
 0x110   :  { %503 = vrot.lane.b32.xlu0 %v764_v26, %s713_s1  ;;  %475 = vrot.lane.b32.xlu1 %v764_v26, %s711_s20 }
 0x114   :  { %489 = vrot.lane.b32.xlu1 %v764_v26, %s712_s21 }
 0x118   :  { %501 = vrot.lane.b32.xlu1 %v760_v24, %s713_s1 }
 0x12a   :  { %v187_v28 = vpop.permute.xlu0 %186  ;;  %v174_v29 = vpop.permute.xlu1 %173 }
 0x12e   :  { %v201_v30 = vpop.permute.xlu0 %200  ;;  %v176_v31 = vpop.permute.xlu1 %175 }
 0x12f   :  { %v180_v58 = vsel %vm179_vm1, %v174_v29, %v176_v31  ;;  %v181_v59 = vsel %vm179_vm1, %v176_v31, %v174_v29  ;;  %vm421_vm1 = vcmp.lt.s32.totalorder %v831_v48, 111 }
 0x130   :  { %v184_v6 = vmul.f32 %v182_v54, %v181_v59  ;;  %v185_v7 = vmul.f32 %v183_v57, %v180_v58 }
 0x132   :  { %v215_v32 = vpop.permute.xlu0 %214  ;;  %v189_v33 = vpop.permute.xlu1 %188 }
 0x133   :  { %v191_v11 = vsel %vm190_vm0, %v187_v28, %v189_v33  ;;  %v192_v53 = vsel %vm190_vm0, %v189_v33, %v187_v28  ;;  %vm407_vm0 = vcmp.lt.s32.totalorder %v831_v48, 112 }
 0x134   :  { %v196_v0 = vmul.f32 %v571_v51, %v192_v53  ;;  %v197_v1 = vmul.f32 %v572_v52, %v191_v11  ;;  %v583_v11 = vld [vmem:[%s1163_s3 + $0x70] sm:$0xff]  ;;  %v584_v53 = vld [vmem:[%s1163_s3 + $0x78] sm:$0xff] }
 0x136   :  { %v229_v34 = vpop.permute.xlu0 %228  ;;  %v203_v35 = vpop.permute.xlu1 %202  ;;  %v198_v17 = vadd.f32 %v196_v0, %v184_v6  ;;  %v199_v20 = vadd.f32 %v197_v1, %v185_v7 }
 0x137   :  { %v205_v62 = vsel %vm204_vm2, %v201_v30, %v203_v35  ;;  %v206_v63 = vsel %vm204_vm2, %v203_v35, %v201_v30  ;;  %v582_v35 = vld [vmem:[%s1163_s3 + $0x68] sm:$0xff]  ;;  %vm435_vm2 = vcmp.lt.s32.totalorder %v831_v48, 110 }
 0x138   :  { %v210_v8 = vmul.f32 %v573_v60, %v206_v63  ;;  %v211_v9 = vmul.f32 %v574_v61, %v205_v62  ;;  %v585_v62 = vld [vmem:[%s1163_s3 + $0x80] sm:$0xff]  ;;  %v586_v63 = vld [vmem:[%s1163_s3 + $0x88] sm:$0xff] }
 0x13a   :  { %v243_v36 = vpop.permute.xlu0 %242  ;;  %v217_v37 = vpop.permute.xlu1 %216  ;;  %v212_v28 = vadd.f32 %v210_v8, %v198_v17  ;;  %v213_v29 = vadd.f32 %v211_v9, %v199_v20 }
 0x13b   :  { %v219_v4 = vsel %vm218_vm3, %v215_v32, %v217_v37  ;;  %v220_v5 = vsel %vm218_vm3, %v217_v37, %v215_v32  ;;  %vm449_vm3 = vcmp.lt.s32.totalorder %v831_v48, 98 }
 0x13c   :  { %v224_v18 = vmul.f32 %v575_v2, %v220_v5  ;;  %v225_v19 = vmul.f32 %v576_v3, %v219_v4  ;;  %v587_v4 = vld [vmem:[%s1163_s3 + $0x90] sm:$0xff]  ;;  %v588_v5 = vld [vmem:[%s1163_s3 + $0x98] sm:$0xff] }
 0x13e   :  { %v814_v38 = vpop.permute.xlu0 %256  ;;  %v231_v39 = vpop.permute.xlu1 %230 }
 0x13f   :  { %v233_v15 = vsel %vm232_vm4, %v229_v34, %v231_v39  ;;  %v234_v16 = vsel %vm232_vm4, %v231_v39, %v229_v34  ;;  %v581_v34 = vld [vmem:[%s1163_s3 + $0x60] sm:$0xff]  ;;  %v226_v39 = vadd.f32 %v224_v18, %v212_v28  ;;  %vm463_vm4 = vcmp.lt.s32.totalorder %v831_v48, 97 }
 0x140   :  { %v238_v30 = vmul.f32 %v577_v12, %v234_v16  ;;  %v239_v31 = vmul.f32 %v578_v14, %v233_v15  ;;  %v589_v15 = vld [vmem:[%s1163_s3 + $0xa0] sm:$0xff]  ;;  %v590_v16 = vld [vmem:[%s1163_s3 + $0xa8] sm:$0xff] }
 0x142   :  { %v816_v40 = vpop.permute.xlu0 %270  ;;  %v245_v41 = vpop.permute.xlu1 %244 }
 0x143   :  { %v247_v23 = vsel %vm246_vm5, %v243_v36, %v245_v41  ;;  %v248_v25 = vsel %vm246_vm5, %v245_v41, %v243_v36  ;;  %v227_v41 = vadd.f32 %v225_v19, %v213_v29  ;;  %vm477_vm5 = vcmp.lt.s32.totalorder %v831_v48, 96 }
 0x144   :  { %v252_v51 = vmul.f32 %v579_v21, %v248_v25  ;;  %v253_v52 = vmul.f32 %v580_v22, %v247_v23  ;;  %v591_v21 = vld [vmem:[%s1163_s3 + $0xb0] sm:$0xff]  ;;  %v592_v22 = vld [vmem:[%s1163_s3 + $0xb8] sm:$0xff] }
 0x145   :  { %v241_v57 = vadd.f32 %v239_v31, %v227_v41 }
 0x146   :  { %v818_v42 = vpop.permute.xlu0 %284  ;;  %v820_v43 = vpop.permute.xlu1 %258 }
 0x147   :  { %v261_v36 = vsel %vm260_vm6, %v814_v38, %v820_v43  ;;  %v262_v37 = vsel %vm260_vm6, %v820_v43, %v814_v38  ;;  %v240_v43 = vadd.f32 %v238_v30, %v226_v39  ;;  %v255_v1 = vadd.f32 %v253_v52, %v241_v57 }
 0x148   :  { %v266_v58 = vmul.f32 %v581_v34, %v262_v37  ;;  %v267_v59 = vmul.f32 %v582_v35, %v261_v36  ;;  %vm491_vm6 = vcmp.lt.s32.totalorder %v831_v48, 95 }
 0x149   :  { %v254_v0 = vadd.f32 %v252_v51, %v240_v43 }
 0x14a   :  { %v822_v44 = vpop.permute.xlu0 %298  ;;  %v824_v45 = vpop.permute.xlu1 %272  ;;  %v269_v7 = vadd.f32 %v267_v59, %v255_v1 }
 0x14b   :  { %v275_v54 = vsel %vm274_vm7, %v816_v40, %v824_v45  ;;  %v276_v38 = vsel %vm274_vm7, %v824_v45, %v816_v40  ;;  %vm505_vm7 = vcmp.lt.s32.totalorder %v831_v48, 94 }
 0x14c   :  { %v280_v2 = vmul.f32 %v583_v11, %v276_v38  ;;  %v281_v3 = vmul.f32 %v584_v53, %v275_v54  ;;  %v595_v54 = vld [vmem:[%s1163_s3 + $0xd0] sm:$0xff]  ;;  %v596_v38 = vld [vmem:[%s1163_s3 + $0xd8] sm:$0xff] }
 0x14e   :  { %v826_v46 = vpop.permute.xlu0 %312  ;;  %v828_v47 = vpop.permute.xlu1 %286  ;;  %v283_v20 = vadd.f32 %v281_v3, %v269_v7  ;;  %v601_v7 = vld [vmem:[%s1163_s3 + $0x100] sm:$0xff] }
 0x14f   :  { %v289_v40 = vsel %vm288_vm8, %v818_v42, %v828_v47  ;;  %v290_v45 = vsel %vm288_vm8, %v828_v47, %v818_v42  ;;  %v268_v47 = vadd.f32 %v266_v58, %v254_v0  ;;  %vm556_vm8 = vcmask 1043456  }
 0x150   :  { %v294_v8 = vmul.f32 %v585_v62, %v290_v45  ;;  %v295_v9 = vmul.f32 %v586_v63, %v289_v40  ;;  %v597_v40 = vld [vmem:[%s1163_s3 + $0xe0] sm:$0xff]  ;;  %v598_v45 = vld [vmem:[%s1163_s3 + $0xe8] sm:$0xff] }
 0x151   :  { %v282_v17 = vadd.f32 %v280_v2, %v268_v47 }
 0x152   :  { %v834_v49 = vpop.permute.xlu0 %326  ;;  %v836_v50 = vpop.permute.xlu1 %300  ;;  %v297_v25 = vadd.f32 %v295_v9, %v283_v20  ;;  %v604_v20 = vld [vmem:[%s1163_s3 + $0x118] sm:$0xff] }
 0x153   :  { %v303_v6 = vsel %vm302_vm9, %v822_v44, %v836_v50  ;;  %v304_v42 = vsel %vm302_vm9, %v836_v50, %v822_v44 }
 0x154   :  { %v308_v18 = vmul.f32 %v587_v4, %v304_v42  ;;  %v309_v19 = vmul.f32 %v588_v5, %v303_v6  ;;  %v599_v4 = vld [vmem:[%s1163_s3 + $0xf0] sm:$0xff]  ;;  %v600_v5 = vld [vmem:[%s1163_s3 + $0xf8] sm:$0xff] }
 0x156   :  { %v850_v55 = vpop.permute.xlu0 %347  ;;  %v852_v56 = vpop.permute.xlu1 %314  ;;  %v311_v35 = vadd.f32 %v309_v19, %v297_v25  ;;  %v606_v25 = vld [vmem:[%s1163_s3 + $0x128] sm:$0xff] }
 0x157   :  { %v317_v44 = vsel %vm316_vm10, %v826_v46, %v852_v56  ;;  %v318_v50 = vsel %vm316_vm10, %v852_v56, %v826_v46  ;;  %v296_v56 = vadd.f32 %v294_v8, %v282_v17  ;;  %v602_v8 = vld [vmem:[%s1163_s3 + $0x108] sm:$0xff]  ;;  %v603_v17 = vld [vmem:[%s1163_s3 + $0x110] sm:$0xff] }
 0x158   :  { %v322_v28 = vmul.f32 %v589_v15, %v318_v50  ;;  %v323_v29 = vmul.f32 %v590_v16, %v317_v44 }
 0x159   :  { %v310_v34 = vadd.f32 %v308_v18, %v296_v56  ;;  %v605_v56 = vld [vmem:[%s1163_s3 + $0x120] sm:$0xff] }
 0x15a   :  { %v875_v10 = vpop.permute.xlu0 %361  ;;  %v877_v13 = vpop.permute.xlu1 %328  ;;  %v325_v41 = vadd.f32 %v323_v29, %v311_v35 }
 0x15b   :  { %v331_v23 = vsel %vm330_vm11, %v834_v49, %v877_v13  ;;  %v332_v46 = vsel %vm330_vm11, %v877_v13, %v834_v49  ;;  %v324_v39 = vadd.f32 %v322_v28, %v310_v34  ;;  %v593_v49 = vld [vmem:[%s1163_s3 + $0xc0] sm:$0xff]  ;;  %v594_v13 = vld [vmem:[%s1163_s3 + $0xc8] sm:$0xff] }
 0x15c   :  { %v336_v36 = vmul.f32 %v591_v21, %v332_v46  ;;  %v337_v37 = vmul.f32 %v592_v22, %v331_v23  ;;  %v344_v58 = vmul.f32 %v594_v13, %v764_v26  ;;  %v343_v59 = vmul.f32 %v593_v49, %v760_v24 }
 0x15e   :  { %v897_v32 = vpop.permute.xlu0 %375  ;;  %v899_v33 = vpop.permute.xlu1 %349  ;;  %v338_v11 = vadd.f32 %v336_v36, %v324_v39  ;;  %v339_v53 = vadd.f32 %v337_v37, %v325_v41  ;;  %v607_v36 = vld [vmem:[%s1163_s3 + $0x130] sm:$0xff]  ;;  %v608_v37 = vld [vmem:[%s1163_s3 + $0x138] sm:$0xff] }
 0x15f   :  { %v352_v43 = vsel %vm351_vm12, %v850_v55, %v899_v33  ;;  %v353_v57 = vsel %vm351_vm12, %v899_v33, %v850_v55 }
 0x160   :  { %v346_v0 = vadd.f32 %v344_v58, %v339_v53  ;;  %v345_v1 = vadd.f32 %v343_v59, %v338_v11  ;;  %v357_v2 = vmul.f32 %v595_v54, %v352_v43  ;;  %v358_v3 = vmul.f32 %v596_v38, %v353_v57  ;;  %v609_v54 = vld [vmem:[%s1163_s3 + $0x140] sm:$0xff]  ;;  %v610_v38 = vld [vmem:[%s1163_s3 + $0x148] sm:$0xff] }
 0x162   :  { %v931_v60 = vpop.permute.xlu0 %389  ;;  %v933_v61 = vpop.permute.xlu1 %363  ;;  %v360_v15 = vadd.f32 %v358_v3, %v346_v0 }
 0x163   :  { %v366_v55 = vsel %vm365_vm13, %v875_v10, %v933_v61  ;;  %v367_v33 = vsel %vm365_vm13, %v933_v61, %v875_v10 }
 0x164   :  { %v371_v47 = vmul.f32 %v597_v40, %v366_v55  ;;  %v372_v10 = vmul.f32 %v598_v45, %v367_v33  ;;  %v611_v40 = vld [vmem:[%s1163_s3 + $0x150] sm:$0xff]  ;;  %v612_v45 = vld [vmem:[%s1163_s3 + $0x158] sm:$0xff] }
 0x166   :  { %v965_v12 = vpop.permute.xlu0 %403  ;;  %v378_v14 = vpop.permute.xlu1 %377  ;;  %v374_v21 = vadd.f32 %v372_v10, %v360_v15 }
 0x167   :  { %v380_v6 = vsel %vm379_vm14, %v897_v32, %v378_v14  ;;  %v381_v42 = vsel %vm379_vm14, %v378_v14, %v897_v32  ;;  %v359_v14 = vadd.f32 %v357_v2, %v345_v1 }
 0x168   :  { %v385_v16 = vmul.f32 %v599_v4, %v380_v6  ;;  %v386_v44 = vmul.f32 %v600_v5, %v381_v42  ;;  %v613_v4 = vld [vmem:[%s1163_s3 + $0x160] sm:$0xff]  ;;  %v614_v5 = vld [vmem:[%s1163_s3 + $0x168] sm:$0xff] }
 0x16a   :  { %v995_v30 = vpop.permute.xlu0 %417  ;;  %v392_v31 = vpop.permute.xlu1 %391 }
 0x16b   :  { %v394_v9 = vsel %vm393_vm15, %v931_v60, %v392_v31  ;;  %v395_v32 = vsel %vm393_vm15, %v392_v31, %v931_v60  ;;  %v373_v60 = vadd.f32 %v371_v47, %v359_v14  ;;  %v388_v31 = vadd.f32 %v386_v44, %v374_v21 }
 0x16c   :  { %v399_v22 = vmul.f32 %v601_v7, %v394_v9  ;;  %v400_v23 = vmul.f32 %v602_v8, %v395_v32  ;;  %v615_v9 = vld [vmem:[%s1163_s3 + $0x170] sm:$0xff]  ;;  %v616_v32 = vld [vmem:[%s1163_s3 + $0x178] sm:$0xff] }
 0x16d   :  { %v387_v29 = vadd.f32 %v385_v16, %v373_v60 }
 0x16e   :  { %v998_v51 = vpop.permute.xlu0 %431  ;;  %v406_v52 = vpop.permute.xlu1 %405 }
 0x16f   :  { %v408_v18 = vsel %vm407_vm0, %v965_v12, %v406_v52  ;;  %v409_v19 = vsel %vm407_vm0, %v406_v52, %v965_v12  ;;  %v401_v41 = vadd.f32 %v399_v22, %v387_v29  ;;  %v402_v52 = vadd.f32 %v400_v23, %v388_v31  ;;  %v617_v22 = vld [vmem:[%s1163_s3 + $0x180] sm:$0xff]  ;;  %v618_v23 = vld [vmem:[%s1163_s3 + $0x188] sm:$0xff] }
 0x170   :  { %v413_v34 = vmul.f32 %v603_v17, %v408_v18  ;;  %v414_v35 = vmul.f32 %v604_v20, %v409_v19 }
 0x172   :  { %v1020_v62 = vpop.permute.xlu0 %445  ;;  %v420_v63 = vpop.permute.xlu1 %419  ;;  %v415_v57 = vadd.f32 %v413_v34, %v401_v41  ;;  %v416_v58 = vadd.f32 %v414_v35, %v402_v52 }
 0x173   :  { %v422_v28 = vsel %vm421_vm1, %v995_v30, %v420_v63  ;;  %v423_v12 = vsel %vm421_vm1, %v420_v63, %v995_v30 }
 0x174   :  { %v427_v49 = vmul.f32 %v605_v56, %v422_v28  ;;  %v428_v13 = vmul.f32 %v606_v25, %v423_v12 }
 0x176   :  { %v434_v61 = vpop.permute.xlu1 %433  ;;  %v460_v50 = vpop.permute.xlu0 %459  ;;  %v429_v33 = vadd.f32 %v427_v49, %v415_v57  ;;  %v430_v0 = vadd.f32 %v428_v13, %v416_v58  ;;  %v538_v57 = vcombine.low %v760_v24, %v764_v26 }
 0x177   :  { %v436_v39 = vsel %vm435_vm2, %v998_v51, %v434_v61  ;;  %v437_v30 = vsel %vm435_vm2, %v434_v61, %v998_v51 }
 0x178   :  { %v441_v59 = vmul.f32 %v607_v36, %v436_v39  ;;  %v442_v63 = vmul.f32 %v608_v37, %v437_v30 }
 0x17a   :  { %v448_v46 = vpop.permute.xlu1 %447  ;;  %v474_v11 = vpop.permute.xlu0 %473  ;;  %v443_v47 = vadd.f32 %v441_v59, %v429_v33  ;;  %v444_v10 = vadd.f32 %v442_v63, %v430_v0  ;;  %v621_v63 = vcombine.low %v764_v26, %v764_v26 }
 0x17b   :  { %v450_v51 = vsel %vm449_vm3, %v1020_v62, %v448_v46  ;;  %v451_v43 = vsel %vm449_vm3, %v448_v46, %v1020_v62 }
 0x17c   :  { %v455_v1 = vmul.f32 %v609_v54, %v450_v51  ;;  %v456_v2 = vmul.f32 %v610_v38, %v451_v43 }
 0x17e   :  { %v462_v53 = vpop.permute.xlu1 %461  ;;  %v488_v61 = vpop.permute.xlu0 %487  ;;  %v457_v14 = vadd.f32 %v455_v1, %v443_v47  ;;  %v458_v15 = vadd.f32 %v456_v2, %v444_v10 }
 0x17f   :  { %v464_v55 = vsel %vm463_vm4, %v460_v50, %v462_v53  ;;  %v465_v62 = vsel %vm463_vm4, %v462_v53, %v460_v50 }
 0x180   :  { %v469_v7 = vmul.f32 %v611_v40, %v464_v55  ;;  %v470_v8 = vmul.f32 %v612_v45, %v465_v62  ;;  %v622_v40 = vcombine.high %v764_v26, %v764_v26 }
 0x182   :  { %v476_v3 = vpop.permute.xlu1 %475  ;;  %v471_v18 = vadd.f32 %v469_v7, %v457_v14  ;;  %v472_v19 = vadd.f32 %v470_v8, %v458_v15  ;;  %v504_v46 = vpop.permute.xlu0 %503 }
 0x183   :  { %v478_v6 = vsel %vm477_vm5, %v474_v11, %v476_v3  ;;  %v479_v42 = vsel %vm477_vm5, %v476_v3, %v474_v11 }
 0x184   :  { %v483_v16 = vmul.f32 %v613_v4, %v478_v6  ;;  %v484_v44 = vmul.f32 %v614_v5, %v479_v42 }
 0x186   :  { %v490_v50 = vpop.permute.xlu1 %489  ;;  %v485_v56 = vadd.f32 %v483_v16, %v471_v18  ;;  %v486_v25 = vadd.f32 %v484_v44, %v472_v19 }
 0x187   :  { %v492_v17 = vsel %vm491_vm6, %v488_v61, %v490_v50  ;;  %v493_v20 = vsel %vm491_vm6, %v490_v50, %v488_v61 }
 0x188   :  { %v497_v60 = vmul.f32 %v615_v9, %v492_v17  ;;  %v498_v21 = vmul.f32 %v616_v32, %v493_v20 }
 0x18a   :  { %v502_v28 = vpop.permute.xlu1 %501  ;;  %v499_v31 = vadd.f32 %v497_v60, %v485_v56  ;;  %v500_v48 = vadd.f32 %v498_v21, %v486_v25 }
 0x18b   :  { %v506_v12 = vsel %vm505_vm7, %v502_v28, %v504_v46  ;;  %v507_v29 = vsel %vm505_vm7, %v504_v46, %v502_v28 }
 0x18c   :  { %v511_v34 = vmul.f32 %v617_v22, %v506_v12  ;;  %v512_v35 = vmul.f32 %v618_v23, %v507_v29 }
 0x18e   :  { %v513_v36 = vadd.f32 %v511_v34, %v499_v31  ;;  %v514_v37 = vadd.f32 %v512_v35, %v500_v48 }
 0x190   :  { %v520_v39 = vadd.f32 %v812_v27, %v513_v36  ;;  %v521_v30 = vadd.f32 %v812_v27, %v514_v37  ;;  %v539_v27 = vcombine.high %v760_v24, %v764_v26 }
 0x192   :  { %v619_v41 = vmul.f32 -1.442695, %v520_v39  ;;  %v620_v52 = vmul.f32 -1.442695, %v521_v30 }
 0x194   :  { %674 = vpow2.f32 %v619_v41 }
 0x195   :  { %676 = vpow2.f32 %v620_v52 }
 0x19e   :  { %v675_v49 = vpop.eup %674 }
 0x19f   :  { %v677_v13 = vpop.eup %676  ;;  %v528_v11 = vadd.f32 1.0, %v675_v49 }
 0x1a0   :  { %v529_v53 = vadd.f32 1.0, %v677_v13 }
 0x1a1   :  { %678 = vrcp.f32 %v528_v11 }
 0x1a2   :  { %680 = vrcp.f32 %v529_v53 }
 0x1ab   :  { %v679_v54 = vpop.eup %678 }
 0x1ac   :  { %v681_v38 = vpop.eup %680  ;;  %v534_v51 = vmul.f32 %v679_v54, %v520_v39 }
 0x1ad   :  { %v535_v43 = vmul.f32 %v681_v38, %v521_v30 }
 0x1ae   :  { %v623_v58 = vcombine.low %v534_v51, %v534_v51  ;;  %v624_v59 = vcombine.high %v534_v51, %v534_v51 }
 0x1af   :  { %v544_v45 = vcombine.low %v534_v51, %v535_v43  ;;  %v545_v55 = vcombine.high %v534_v51, %v535_v43 }
 0x1b0   :  { %v557_v62 = vsel %vm556_vm8, %v538_v57, %v623_v58  ;;  %v559_v33 = vsel %vm556_vm8, %v539_v27, %v624_v59 }
 0x1b1   :  { %v558_v0 = vsel %vm556_vm8, %v621_v63, %v544_v45  ;;  %v560_v1 = vsel %vm556_vm8, %v622_v40, %v545_v55  ;;  %561 = vst [vmem:[%s1164_s5] sm:$0xff] %v557_v62  ;;  %563 = vst [vmem:[%s1164_s5 + $0x10] sm:$0xff] %v559_v33 }
 0x1b2   :  { %562 = vst [vmem:[%s1164_s5 + $0x8] sm:$0xff] %v558_v0  ;;  %564 = vst [vmem:[%s1164_s5 + $0x18] sm:$0xff] %v560_v1 }

</bundles_post_ra>
